<compile_context>
chip_gen: v6e
topology: v6e:2x2x1
jax: 0.10.0
libtpu: 0.0.40
codegen_flags: <defaults>
</compile_context>

<pallas_src>
import functools

import jax
import jax.numpy as jnp
from jax.experimental import pallas as pl
from jax.experimental.pallas import tpu as pltpu

EPS = 1e-12


def _round_up(x, m):
    return (x + m - 1) // m * m


def _resident(shape):
    """BlockSpec for a whole array kept VMEM-resident across the batch grid."""
    nd = len(shape)
    return pl.BlockSpec(tuple(shape), lambda i, _nd=nd: (0,) * _nd)


def _l2_normalize(x):
    # Matches the module's l2_normalize: x * rsqrt(max(sum(x^2), eps)).
    square_sum = jnp.sum(x * x, axis=-1, keepdims=True)
    return x * jax.lax.rsqrt(jnp.maximum(square_sum, EPS))


def _similarity_block(key_ref, cls_ref):
    pnorm = _l2_normalize(key_ref[...])            # (P, D)   f32
    xnorm = _l2_normalize(cls_ref[...])            # (TB, D)  f32
    # Contract last dims of both operands -> (TB, P); no explicit transpose of
    # the key matrix (no XLU relayout before the MXU push).  Kept in f32.
    sim_raw = jax.lax.dot_general(
        xnorm, pnorm, (((1,), (1,)), ((), ())),
        preferred_element_type=jnp.float32)
    return pnorm, xnorm, sim_raw


# ------------------------------------------------------------------
# Fused kernel (training): similarity + full VAE forward, batch-tiled
# ------------------------------------------------------------------
def _fused_train_kernel(key_ref, cls_ref, freq_ref,
                        we1_ref, be1_ref, wmv_ref, bmv_ref,
                        wd1_ref, bd1_ref, wd2_ref, bd2_ref, eps_ref,
                        pnorm_ref, xnorm_ref, sim_ref, simraw_ref,
                        xhat_ref, mean_ref, logvar_ref):
    pnorm, xnorm, sim_raw = _similarity_block(key_ref, cls_ref)
    # pnorm is batch-independent: every grid step writes the identical block
    # (benign duplicate write; keeps the batch axis safely "parallel").
    pnorm_ref[...] = pnorm
    xnorm_ref[...] = xnorm
    simraw_ref[...] = sim_raw
    # TODO(synk): `compute_similarity` is undefined in the source module; we
    # assume frequency-penalized cosine similarity during training.
    # One reciprocal over the tiny (1, P) row + a vmul (no (TB, P) vdiv).
    sim_ref[...] = sim_raw * pl.reciprocal(freq_ref[...])

    D = cls_ref.shape[-1]
    x = cls_ref[...]
    # Encoder: ReLU(x @ W1 + b1); bf16 weights, f32 accumulation.
    h = jnp.maximum(
        jnp.dot(x.astype(jnp.bfloat16), we1_ref[...],
                preferred_element_type=jnp.float32) + be1_ref[...], 0.0)
    # Packed mean|log_var projection: one (H, 2D) matmul instead of two (H, D).
    mv = jnp.dot(h.astype(jnp.bfloat16), wmv_ref[...],
                 preferred_element_type=jnp.float32) + bmv_ref[...]
    mean = mv[:, :D]
    log_var = mv[:, D:]
    z = mean + jnp.exp(0.5 * log_var) * eps_ref[...]
    hd = jnp.maximum(
        jnp.dot(z.astype(jnp.bfloat16), wd1_ref[...],
                preferred_element_type=jnp.float32) + bd1_ref[...], 0.0)
    xhat_ref[...] = (
        jnp.dot(hd.astype(jnp.bfloat16), wd2_ref[...],
                preferred_element_type=jnp.float32) + bd2_ref[...])
    mean_ref[...] = mean
    logvar_ref[...] = log_var


def fused_train_pallas(p, frequency, cls_features, eps_noise, *, tb=None):
    P, D = p['prompt_key'].shape
    B = cls_features.shape[0]
    if tb is None:
        tb = min(_round_up(B, 8), 256)
    tb = _round_up(tb, 8)
    Bp = _round_up(B, tb)
    if Bp != B:
        pad = ((0, Bp - B), (0, 0))
        cls_features = jnp.pad(cls_features, pad)
        eps_noise = jnp.pad(eps_noise, pad)
    freq2 = frequency.reshape(1, P).astype(jnp.float32)

    btile_d = pl.BlockSpec((tb, D), lambda i: (i, 0))
    btile_p = pl.BlockSpec((tb, P), lambda i: (i, 0))

    args = (p['prompt_key'], cls_features, freq2,
            p['enc_w1'], p['enc_b1'], p['enc_wmv'], p['enc_bmv'],
            p['dec_w1'], p['dec_b1'], p['dec_w2'], p['dec_b2'],
            eps_noise)
    in_specs = [_resident(p['prompt_key'].shape), btile_d, _resident(freq2.shape),
                _resident(p['enc_w1'].shape), _resident(p['enc_b1'].shape),
                _resident(p['enc_wmv'].shape), _resident(p['enc_bmv'].shape),
                _resident(p['dec_w1'].shape), _resident(p['dec_b1'].shape),
                _resident(p['dec_w2'].shape), _resident(p['dec_b2'].shape),
                btile_d]
    out_specs = (_resident((P, D)), btile_d, btile_p, btile_p,
                 btile_d, btile_d, btile_d)
    out_shape = (jax.ShapeDtypeStruct((P, D), jnp.float32),   # prompt_norm
                 jax.ShapeDtypeStruct((Bp, D), jnp.float32),  # x_embed_norm
                 jax.ShapeDtypeStruct((Bp, P), jnp.float32),  # sim (penalized)
                 jax.ShapeDtypeStruct((Bp, P), jnp.float32),  # sim (raw)
                 jax.ShapeDtypeStruct((Bp, D), jnp.float32),  # x_hat
                 jax.ShapeDtypeStruct((Bp, D), jnp.float32),  # mean
                 jax.ShapeDtypeStruct((Bp, D), jnp.float32))  # log_var
    outs = pl.pallas_call(
        _fused_train_kernel,
        grid=(Bp // tb,),
        in_specs=in_specs,
        out_specs=out_specs,
        out_shape=out_shape,
        compiler_params=pltpu.CompilerParams(
            dimension_semantics=("parallel",)),
    )(*args)
    if Bp != B:
        outs = (outs[0],) + tuple(o[:B] for o in outs[1:])
    return outs


# ------------------------------------------------------------------
# Fused kernel (inference): similarity + decoder-only path, batch-tiled
# ------------------------------------------------------------------
def _fused_infer_kernel(key_ref, cls_ref, wd1_ref, bd1_ref, wd2_ref, bd2_ref,
                        z_ref, pnorm_ref, xnorm_ref, sim_ref, xhat_ref):
    pnorm, xnorm, sim_raw = _similarity_block(key_ref, cls_ref)
    pnorm_ref[...] = pnorm
    xnorm_ref[...] = xnorm
    sim_ref[...] = sim_raw
    # TODO(synk): matches the PyTorch path generator.inference(randn(cls.shape));
    # z is supplied as an input (in-kernel RNG not needed for parity).
    z = z_ref[...]
    hd = jnp.maximum(
        jnp.dot(z.astype(jnp.bfloat16), wd1_ref[...],
                preferred_element_type=jnp.float32) + bd1_ref[...], 0.0)
    xhat_ref[...] = (
        jnp.dot(hd.astype(jnp.bfloat16), wd2_ref[...],
                preferred_element_type=jnp.float32) + bd2_ref[...])


def fused_infer_pallas(p, cls_features, z, *, tb=None):
    P, D = p['prompt_key'].shape
    B = cls_features.shape[0]
    if tb is None:
        tb = min(_round_up(B, 8), 256)
    tb = _round_up(tb, 8)
    Bp = _round_up(B, tb)
    if Bp != B:
        pad = ((0, Bp - B), (0, 0))
        cls_features = jnp.pad(cls_features, pad)
        z = jnp.pad(z, pad)

    btile_d = pl.BlockSpec((tb, D), lambda i: (i, 0))
    btile_p = pl.BlockSpec((tb, P), lambda i: (i, 0))

    args = (p['prompt_key'], cls_features,
            p['dec_w1'], p['dec_b1'], p['dec_w2'], p['dec_b2'], z)
    in_specs = [_resident(p['prompt_key'].shape), btile_d,
                _resident(p['dec_w1'].shape), _resident(p['dec_b1'].shape),
                _resident(p['dec_w2'].shape), _resident(p['dec_b2'].shape),
                btile_d]
    out_specs = (_resident((P, D)), btile_d, btile_p, btile_d)
    out_shape = (jax.ShapeDtypeStruct((P, D), jnp.float32),
                 jax.ShapeDtypeStruct((Bp, D), jnp.float32),
                 jax.ShapeDtypeStruct((Bp, P), jnp.float32),
                 jax.ShapeDtypeStruct((Bp, D), jnp.float32))
    outs = pl.pallas_call(
        _fused_infer_kernel,
        grid=(Bp // tb,),
        in_specs=in_specs,
        out_specs=out_specs,
        out_shape=out_shape,
        compiler_params=pltpu.CompilerParams(
            dimension_semantics=("parallel",)),
    )(*args)
    if Bp != B:
        outs = (outs[0],) + tuple(o[:B] for o in outs[1:])
    return outs


# ------------------------------------------------------------------
# Prompt assembly: writes the final prompted_embedding slab directly.
#   rows [0, K*L)      prompt_pool[idx[b,k]] + synthesized[b]
#   row  K*L           cls_features[b]
#   rows [K*L+1, end)  x_embed[b]
# ------------------------------------------------------------------
def _assemble_kernel(idx_ref, prompt_hbm, synth_ref, cls_ref, xemb_ref,
                     out_ref, pbuf, sem, *, top_k, length):
    b = pl.program_id(0)
    # Launch all K pool-row gathers concurrently (data-dependent HBM gather
    # driven by the SMEM-prefetched idx table).
    copies = []
    for k in range(top_k):
        cp = pltpu.make_async_copy(prompt_hbm.at[idx_ref[b, k]],
                                   pbuf.at[k], sem.at[k])
        cp.start()
        copies.append(cp)

    # While the prompt DMAs are in flight, copy the cls row and x_embed rows.
    n_prompt = top_k * length
    n_tok = xemb_ref.shape[0]
    out_ref[pl.ds(n_prompt, 1), :] = cls_ref[...]          # (1, D)
    out_ref[pl.ds(n_prompt + 1, n_tok), :] = xemb_ref[...]  # (N, D)

    s = synth_ref[...]                                      # (1, D)
    for k in range(top_k):
        copies[k].wait()
        out_ref[pl.ds(k * length, length), :] = pbuf[k] + s  # (L, D) + (1, D)


def assemble_pallas(prompt_pool, synthesized, cls_features, x_embed, idx):
    _, L, D = prompt_pool.shape
    B, K = idx.shape
    N = x_embed.shape[1]
    T = K * L + 1 + N

    synth3 = synthesized.reshape(B, 1, D)
    cls3 = cls_features.reshape(B, 1, D)

    grid_spec = pltpu.PrefetchScalarGridSpec(
        num_scalar_prefetch=1,
        grid=(B,),
        in_specs=[
            pl.BlockSpec(memory_space=pl.ANY),                         # pool (HBM)
            pl.BlockSpec((None, 1, D), lambda b, idx_ref: (b, 0, 0)),  # synthesized[b]
            pl.BlockSpec((None, 1, D), lambda b, idx_ref: (b, 0, 0)),  # cls[b]
            pl.BlockSpec((None, N, D), lambda b, idx_ref: (b, 0, 0)),  # x_embed[b]
        ],
        out_specs=pl.BlockSpec((None, T, D), lambda b, idx_ref: (b, 0, 0)),
        scratch_shapes=[pltpu.VMEM((K, L, D), prompt_pool.dtype),
                        pltpu.SemaphoreType.DMA((K,))],
    )
    return pl.pallas_call(
        functools.partial(_assemble_kernel, top_k=K, length=L),
        grid_spec=grid_spec,
        out_shape=jax.ShapeDtypeStruct((B, T, D), jnp.float32),
        compiler_params=pltpu.CompilerParams(
            dimension_semantics=("parallel",)),
    )(idx, prompt_pool, synth3, cls3, x_embed)


# ------------------------------------------------------------------
# Parameter init (deterministic; matches shapes from __init__)
# ------------------------------------------------------------------
def init_params(key, pool_size, length, embed_dim, input_dim, hidden_dim):
    ks = jax.random.split(key, 8)
    # Zero-pad the hidden dim to a lane-dense multiple of 128 (exactly
    # semantics-preserving: padded rows/cols are zero).
    hidden_pad = _round_up(hidden_dim, 128)

    def unif(k, shape):
        return jax.random.uniform(k, shape, jnp.float32, -1.0, 1.0)

    def linear(k, fan_in, fan_out, pad_out=0):
        k1, k2 = jax.random.split(k)
        bound = 1.0 / (fan_in ** 0.5)
        w = jax.random.uniform(k1, (fan_in, fan_out), jnp.float32, -bound, bound)
        b = jax.random.uniform(k2, (1, fan_out), jnp.float32, -bound, bound)
        if pad_out and pad_out > fan_out:
            w = jnp.pad(w, ((0, 0), (0, pad_out - fan_out)))
            b = jnp.pad(b, ((0, 0), (0, pad_out - fan_out)))
        return w, b

    p = {}
    p['prompt'] = unif(ks[0], (pool_size, length, embed_dim))
    p['prompt_key'] = unif(ks[1], (pool_size, embed_dim))

    w1, b1 = linear(ks[2], input_dim, hidden_dim, pad_out=hidden_pad)
    wm, bm = linear(ks[3], hidden_dim, input_dim)
    wv, bv = linear(ks[4], hidden_dim, input_dim)
    # Pack mean|log_var projections once at init: one (H, 2D) matmul in-kernel.
    wmv = jnp.concatenate([wm, wv], axis=1)
    bmv = jnp.concatenate([bm, bv], axis=1)
    if hidden_pad != hidden_dim:
        wmv = jnp.pad(wmv, ((0, hidden_pad - hidden_dim), (0, 0)))

    wd1, bd1 = linear(ks[5], input_dim, hidden_dim, pad_out=hidden_pad)
    wd2, bd2 = linear(ks[6], hidden_dim, input_dim)
    if hidden_pad != hidden_dim:
        wd2 = jnp.pad(wd2, ((0, hidden_pad - hidden_dim), (0, 0)))

    # bf16 weights (half the HBM->VMEM traffic, 2x MXU rate); f32 biases.
    bf = jnp.bfloat16
    p['enc_w1'], p['enc_b1'] = w1.astype(bf), b1
    p['enc_wmv'], p['enc_bmv'] = wmv.astype(bf), bmv
    p['dec_w1'], p['dec_b1'] = wd1.astype(bf), bd1
    p['dec_w2'], p['dec_b2'] = wd2.astype(bf), bd2
    return p


# ------------------------------------------------------------------
# Full GeneratorPrompt.forward
# ------------------------------------------------------------------
def generator_prompt_forward(params, frequency, x_embed, cls_features,
                             eps_noise, *, is_training=True, top_k=2,
                             batch_tile=None):
    B = cls_features.shape[0]
    length = params['prompt'].shape[1]

    # ---- fused similarity (+ VAE / decoder) -----------------------------
    if is_training:
        (prompt_norm, x_embed_norm, similarity, sim_raw,
         synthesized, mean, log_var) = fused_train_pallas(
            params, frequency, cls_features, eps_noise, tb=batch_tile)
    else:
        prompt_norm, x_embed_norm, sim_raw, synthesized = fused_infer_pallas(
            params, cls_features, eps_noise, tb=batch_tile)
        similarity = sim_raw
        mean, log_var = None, None

    # ---- top-k selection (prompt_mask is None, batchwise_prompt=False) --
    _, idx = jax.lax.top_k(similarity, top_k)            # (B, top_k) int32

    # ---- frequency bookkeeping (vectorized scatter-add; top-k rows are
    #      duplicate-free, so this matches the PyTorch per-row loop) ------
    new_freq = frequency
    if is_training:
        new_freq = frequency.at[idx.reshape(-1)].add(1.0)

    # ---- reduce_sim from the already-computed UN-penalized cosine sim ---
    reduce_sim = (jnp.sum(jnp.take_along_axis(sim_raw, idx, axis=1))
                  / x_embed.shape[0])

    # ---- assemble the final prompted_embedding slab in ONE kernel -------
    prompted_embedding = assemble_pallas(
        params['prompt'], synthesized, cls_features, x_embed, idx)

    batched_key_norm = prompt_norm[idx]                   # (B, top_k, D)

    out = {}
    out['mean'] = mean
    out['var'] = log_var
    out['cls_features'] = cls_features
    out['synthesized_features'] = synthesized
    out['prompt_idx'] = idx
    out['prompt_norm'] = prompt_norm
    out['x_embed_norm'] = x_embed_norm
    out['similarity'] = similarity
    out['selected_key'] = batched_key_norm
    out['reduce_sim'] = reduce_sim
    out['total_prompt_len'] = top_k * length + 1
    out['prompted_embedding'] = prompted_embedding
    return out, new_freq


# ------------------------------------------------------------------
# Plain-JAX VAE reference (same bf16 weight casts) for the self-check
# ------------------------------------------------------------------
def _vae_ref(p, x, eps):
    D = x.shape[-1]
    h = jnp.maximum(jnp.dot(x.astype(jnp.bfloat16), p['enc_w1'],
                            preferred_element_type=jnp.float32) + p['enc_b1'], 0.0)
    mv = jnp.dot(h.astype(jnp.bfloat16), p['enc_wmv'],
                 preferred_element_type=jnp.float32) + p['enc_bmv']
    mean, log_var = mv[:, :D], mv[:, D:]
    z = mean + jnp.exp(0.5 * log_var) * eps
    hd = jnp.maximum(jnp.dot(z.astype(jnp.bfloat16), p['dec_w1'],
                             preferred_element_type=jnp.float32) + p['dec_b1'], 0.0)
    xhat = jnp.dot(hd.astype(jnp.bfloat16), p['dec_w2'],
                   preferred_element_type=jnp.float32) + p['dec_b2']
    return xhat, mean, log_var


if __name__ == "__main__":
    key = jax.random.PRNGKey(0)
    # Small-but-lane-dense shapes (embed_dim multiple of 128; real module uses
    # embed_dim=768, hidden_dim=400 -> padded to 512).  batch_tile=8 with B=16
    # gives a 2-step batch grid so the tiled/pipelined path is exercised.
    B, N, D, HID, L = 16, 8, 128, 200, 5
    POOL, TOP_K, TB = 8, 2, 8

    k_param, k_x, k_cls, k_eps = jax.random.split(key, 4)
    params = init_params(k_param, POOL, L, D, D, HID)

    x_embed = jax.random.normal(k_x, (B, N, D), jnp.float32)
    cls_features = jax.random.normal(k_cls, (B, D), jnp.float32)
    eps_noise = jax.random.normal(k_eps, (B, D), jnp.float32)  # reparam noise
    frequency = jnp.ones((POOL,), jnp.float32)

    # ---- training path ----------------------------------------------------
    out, new_freq = generator_prompt_forward(
        params, frequency, x_embed, cls_features, eps_noise,
        is_training=True, top_k=TOP_K, batch_tile=TB)
    jax.block_until_ready(out['prompted_embedding'])
    jax.block_until_ready(out['reduce_sim'])

    T = TOP_K * L + 1 + N
    assert out['similarity'].shape == (B, POOL)
    assert out['synthesized_features'].shape == (B, D)
    assert out['mean'].shape == (B, D) and out['var'].shape == (B, D)
    assert out['prompted_embedding'].shape == (B, T, D)
    assert out['total_prompt_len'] == TOP_K * L + 1
    assert out['selected_key'].shape == (B, TOP_K, D)
    assert float(jnp.sum(new_freq)) == POOL + B * TOP_K

    # self-check: assembled slab == gather+add / cls / x_embed references
    pe = out['prompted_embedding']
    ref_prompt = (params['prompt'][out['prompt_idx']].reshape(B, TOP_K * L, D)
                  + out['synthesized_features'][:, None, :])
    assert jnp.allclose(pe[:, :TOP_K * L, :], ref_prompt, atol=1e-6)
    assert jnp.array_equal(pe[:, TOP_K * L, :], cls_features)
    assert jnp.array_equal(pe[:, TOP_K * L + 1:, :], x_embed)

    # self-check: reduce_sim via take_along_axis(sim_raw) matches the module's
    # sum(prompt_norm[idx] * x_embed_norm) / B formulation
    ref_reduce = jnp.sum(out['prompt_norm'][out['prompt_idx']]
                         * out['x_embed_norm'][:, None, :]) / B
    assert jnp.allclose(out['reduce_sim'], ref_reduce, rtol=1e-3, atol=1e-3)

    # self-check: fused VAE path vs plain-JAX reference (same bf16 casts)
    ref_xhat, ref_mean, ref_logvar = _vae_ref(params, cls_features, eps_noise)
    assert jnp.allclose(out['synthesized_features'], ref_xhat, rtol=1e-2, atol=1e-2)
    assert jnp.allclose(out['mean'], ref_mean, rtol=1e-2, atol=1e-2)
    assert jnp.allclose(out['var'], ref_logvar, rtol=1e-2, atol=1e-2)

    # ---- inference path ----------------------------------------------------
    out_i, freq_i = generator_prompt_forward(
        params, frequency, x_embed, cls_features, eps_noise,
        is_training=False, top_k=TOP_K, batch_tile=TB)
    jax.block_until_ready(out_i['prompted_embedding'])
    assert out_i['mean'] is None and out_i['var'] is None
    assert out_i['synthesized_features'].shape == (B, D)
    assert out_i['prompted_embedding'].shape == (B, T, D)
    assert jnp.allclose(freq_i, frequency)

    print("KERNEL_OK")
</pallas_src>

<mosaic_0001>
module attributes {stable_mosaic.version = 11 : i64} {
  func.func @_fused_train_kernel(%arg0: i32, %arg1: memref<8x128xf32, #tpu.memory_space<vmem>>, %arg2: memref<8x128xf32, #tpu.memory_space<vmem>>, %arg3: memref<1x8xf32, #tpu.memory_space<vmem>>, %arg4: memref<128x256xbf16, #tpu.memory_space<vmem>>, %arg5: memref<1x256xf32, #tpu.memory_space<vmem>>, %arg6: memref<256x256xbf16, #tpu.memory_space<vmem>>, %arg7: memref<1x256xf32, #tpu.memory_space<vmem>>, %arg8: memref<128x256xbf16, #tpu.memory_space<vmem>>, %arg9: memref<1x256xf32, #tpu.memory_space<vmem>>, %arg10: memref<256x128xbf16, #tpu.memory_space<vmem>>, %arg11: memref<1x128xf32, #tpu.memory_space<vmem>>, %arg12: memref<8x128xf32, #tpu.memory_space<vmem>>, %arg13: memref<8x128xf32, #tpu.memory_space<vmem>>, %arg14: memref<8x128xf32, #tpu.memory_space<vmem>>, %arg15: memref<8x8xf32, #tpu.memory_space<vmem>>, %arg16: memref<8x8xf32, #tpu.memory_space<vmem>>, %arg17: memref<8x128xf32, #tpu.memory_space<vmem>>, %arg18: memref<8x128xf32, #tpu.memory_space<vmem>>, %arg19: memref<8x128xf32, #tpu.memory_space<vmem>>) attributes {dimension_semantics = [#tpu.dimension_semantics<parallel>], iteration_bounds = array<i64: 2>, scalar_prefetch = 0 : i64, scratch_operands = 0 : i64, tpu.core_type = #tpu.core_type<tc>, window_params = [{pipeline_mode = #tpu.pipeline_mode<synchronous>, transform_indices = @transform_0, window_bounds = array<i64: 8, 128>}, {transform_indices = @transform_1, window_bounds = array<i64: 8, 128>}, {pipeline_mode = #tpu.pipeline_mode<synchronous>, transform_indices = @transform_2, window_bounds = array<i64: 1, 8>}, {pipeline_mode = #tpu.pipeline_mode<synchronous>, transform_indices = @transform_3, window_bounds = array<i64: 128, 256>}, {pipeline_mode = #tpu.pipeline_mode<synchronous>, transform_indices = @transform_4, window_bounds = array<i64: 1, 256>}, {pipeline_mode = #tpu.pipeline_mode<synchronous>, transform_indices = @transform_5, window_bounds = array<i64: 256, 256>}, {pipeline_mode = #tpu.pipeline_mode<synchronous>, transform_indices = @transform_6, window_bounds = array<i64: 1, 256>}, {pipeline_mode = #tpu.pipeline_mode<synchronous>, transform_indices = @transform_7, window_bounds = array<i64: 128, 256>}, {pipeline_mode = #tpu.pipeline_mode<synchronous>, transform_indices = @transform_8, window_bounds = array<i64: 1, 256>}, {pipeline_mode = #tpu.pipeline_mode<synchronous>, transform_indices = @transform_9, window_bounds = array<i64: 256, 128>}, {pipeline_mode = #tpu.pipeline_mode<synchronous>, transform_indices = @transform_10, window_bounds = array<i64: 1, 128>}, {transform_indices = @transform_11, window_bounds = array<i64: 8, 128>}, {pipeline_mode = #tpu.pipeline_mode<synchronous>, transform_indices = @transform_12, window_bounds = array<i64: 8, 128>}, {transform_indices = @transform_13, window_bounds = array<i64: 8, 128>}, {transform_indices = @transform_14, window_bounds = array<i64: 8, 8>}, {transform_indices = @transform_15, window_bounds = array<i64: 8, 8>}, {transform_indices = @transform_16, window_bounds = array<i64: 8, 128>}, {transform_indices = @transform_17, window_bounds = array<i64: 8, 128>}, {transform_indices = @transform_18, window_bounds = array<i64: 8, 128>}]} {
    %c0 = arith.constant 0 : index
    %c0_0 = arith.constant 0 : index
    %0 = vector.load %arg1[%c0, %c0_0] : memref<8x128xf32, #tpu.memory_space<vmem>>, vector<8x128xf32>
    %1 = arith.mulf %0, %0 : vector<8x128xf32>
    %cst = arith.constant dense<0.000000e+00> : vector<8xf32>
    %2 = vector.multi_reduction <add>, %1, %cst [1] : vector<8x128xf32> to vector<8xf32>
    %3 = vector.shape_cast %2 : vector<8xf32> to vector<8x1xf32>
    %cst_1 = arith.constant 9.99999996E-13 : f32
    %4 = vector.broadcast %cst_1 : f32 to vector<8x1xf32>
    %5 = arith.maximumf %3, %4 : vector<8x1xf32>
    %6 = math.rsqrt %5 : vector<8x1xf32>
    %7 = vector.broadcast %6 : vector<8x1xf32> to vector<8x128xf32>
    %8 = arith.mulf %0, %7 : vector<8x128xf32>
    %c0_2 = arith.constant 0 : index
    %c0_3 = arith.constant 0 : index
    %9 = vector.load %arg2[%c0_2, %c0_3] : memref<8x128xf32, #tpu.memory_space<vmem>>, vector<8x128xf32>
    %10 = arith.mulf %9, %9 : vector<8x128xf32>
    %cst_4 = arith.constant dense<0.000000e+00> : vector<8xf32>
    %11 = vector.multi_reduction <add>, %10, %cst_4 [1] : vector<8x128xf32> to vector<8xf32>
    %12 = vector.shape_cast %11 : vector<8xf32> to vector<8x1xf32>
    %cst_5 = arith.constant 9.99999996E-13 : f32
    %13 = vector.broadcast %cst_5 : f32 to vector<8x1xf32>
    %14 = arith.maximumf %12, %13 : vector<8x1xf32>
    %15 = math.rsqrt %14 : vector<8x1xf32>
    %16 = vector.broadcast %15 : vector<8x1xf32> to vector<8x128xf32>
    %17 = arith.mulf %9, %16 : vector<8x128xf32>
    %cst_6 = arith.constant dense<0.000000e+00> : vector<8x8xf32>
    %18 = tpu.matmul %17, %8, %cst_6 {dimension_numbers = #tpu.dot_dimension_numbers<[1], [1], [0], [0], [0, 0, 1, 0], [], []>} : vector<8x128xf32>, vector<8x128xf32>, vector<8x8xf32> -> vector<8x8xf32>
    %c0_7 = arith.constant 0 : index
    %c0_8 = arith.constant 0 : index
    %19 = vector.load %arg13[%c0_7, %c0_8] : memref<8x128xf32, #tpu.memory_space<vmem>>, vector<8x128xf32>
    tpu.vector_store %arg13[%c0_7, %c0_8], %8 {strides = array<i32>} : memref<8x128xf32, #tpu.memory_space<vmem>>, vector<8x128xf32>,
    %c0_9 = arith.constant 0 : index
    %c0_10 = arith.constant 0 : index
    %20 = vector.load %arg14[%c0_9, %c0_10] : memref<8x128xf32, #tpu.memory_space<vmem>>, vector<8x128xf32>
    tpu.vector_store %arg14[%c0_9, %c0_10], %17 {strides = array<i32>} : memref<8x128xf32, #tpu.memory_space<vmem>>, vector<8x128xf32>,
    %c0_11 = arith.constant 0 : index
    %c0_12 = arith.constant 0 : index
    %21 = vector.load %arg16[%c0_11, %c0_12] : memref<8x8xf32, #tpu.memory_space<vmem>>, vector<8x8xf32>
    tpu.vector_store %arg16[%c0_11, %c0_12], %18 {strides = array<i32>} : memref<8x8xf32, #tpu.memory_space<vmem>>, vector<8x8xf32>,
    %c0_13 = arith.constant 0 : index
    %c0_14 = arith.constant 0 : index
    %22 = vector.load %arg3[%c0_13, %c0_14] : memref<1x8xf32, #tpu.memory_space<vmem>>, vector<1x8xf32>
    %23 = tpu.reciprocal %22 : vector<1x8xf32> -> vector<1x8xf32>
    %24 = vector.broadcast %23 : vector<1x8xf32> to vector<8x8xf32>
    %25 = arith.mulf %18, %24 : vector<8x8xf32>
    %c0_15 = arith.constant 0 : index
    %c0_16 = arith.constant 0 : index
    %26 = vector.load %arg15[%c0_15, %c0_16] : memref<8x8xf32, #tpu.memory_space<vmem>>, vector<8x8xf32>
    tpu.vector_store %arg15[%c0_15, %c0_16], %25 {strides = array<i32>} : memref<8x8xf32, #tpu.memory_space<vmem>>, vector<8x8xf32>,
    %c0_17 = arith.constant 0 : index
    %c0_18 = arith.constant 0 : index
    %27 = vector.load %arg2[%c0_17, %c0_18] : memref<8x128xf32, #tpu.memory_space<vmem>>, vector<8x128xf32>
    %28 = arith.truncf %27 : vector<8x128xf32> to vector<8x128xbf16>
    %c0_19 = arith.constant 0 : index
    %c0_20 = arith.constant 0 : index
    %29 = vector.load %arg4[%c0_19, %c0_20] : memref<128x256xbf16, #tpu.memory_space<vmem>>, vector<128x256xbf16>
    %cst_21 = arith.constant dense<0.000000e+00> : vector<8x256xf32>
    %30 = tpu.matmul %28, %29, %cst_21 {dimension_numbers = #tpu.dot_dimension_numbers<[1], [0], [0], [1], [0, 0, 1, 1], [], []>} : vector<8x128xbf16>, vector<128x256xbf16>, vector<8x256xf32> -> vector<8x256xf32>
    %c0_22 = arith.constant 0 : index
    %c0_23 = arith.constant 0 : index
    %31 = vector.load %arg5[%c0_22, %c0_23] : memref<1x256xf32, #tpu.memory_space<vmem>>, vector<1x256xf32>
    %32 = vector.broadcast %31 : vector<1x256xf32> to vector<8x256xf32>
    %33 = arith.addf %30, %32 : vector<8x256xf32>
    %cst_24 = arith.constant 0.000000e+00 : f32
    %34 = vector.broadcast %cst_24 : f32 to vector<8x256xf32>
    %35 = arith.maximumf %33, %34 : vector<8x256xf32>
    %36 = arith.truncf %35 : vector<8x256xf32> to vector<8x256xbf16>
    %c0_25 = arith.constant 0 : index
    %c0_26 = arith.constant 0 : index
    %37 = vector.load %arg6[%c0_25, %c0_26] : memref<256x256xbf16, #tpu.memory_space<vmem>>, vector<256x256xbf16>
    %cst_27 = arith.constant dense<0.000000e+00> : vector<8x256xf32>
    %38 = tpu.matmul %36, %37, %cst_27 {dimension_numbers = #tpu.dot_dimension_numbers<[1], [0], [0], [1], [0, 0, 1, 1], [], []>} : vector<8x256xbf16>, vector<256x256xbf16>, vector<8x256xf32> -> vector<8x256xf32>
    %c0_28 = arith.constant 0 : index
    %c0_29 = arith.constant 0 : index
    %39 = vector.load %arg7[%c0_28, %c0_29] : memref<1x256xf32, #tpu.memory_space<vmem>>, vector<1x256xf32>
    %40 = vector.broadcast %39 : vector<1x256xf32> to vector<8x256xf32>
    %41 = arith.addf %38, %40 : vector<8x256xf32>
    %42 = vector.extract_strided_slice %41 {offsets = [0, 0], sizes = [8, 128], strides = [1, 1]} : vector<8x256xf32> to vector<8x128xf32>
    %43 = vector.extract_strided_slice %41 {offsets = [0, 128], sizes = [8, 128], strides = [1, 1]} : vector<8x256xf32> to vector<8x128xf32>
    %cst_30 = arith.constant 5.000000e-01 : f32
    %44 = vector.broadcast %cst_30 : f32 to vector<8x128xf32>
    %45 = arith.mulf %44, %43 : vector<8x128xf32>
    %46 = math.exp %45 : vector<8x128xf32>
    %c0_31 = arith.constant 0 : index
    %c0_32 = arith.constant 0 : index
    %47 = vector.load %arg12[%c0_31, %c0_32] : memref<8x128xf32, #tpu.memory_space<vmem>>, vector<8x128xf32>
    %48 = arith.mulf %46, %47 : vector<8x128xf32>
    %49 = arith.addf %42, %48 : vector<8x128xf32>
    %50 = arith.truncf %49 : vector<8x128xf32> to vector<8x128xbf16>
    %c0_33 = arith.constant 0 : index
    %c0_34 = arith.constant 0 : index
    %51 = vector.load %arg8[%c0_33, %c0_34] : memref<128x256xbf16, #tpu.memory_space<vmem>>, vector<128x256xbf16>
    %cst_35 = arith.constant dense<0.000000e+00> : vector<8x256xf32>
    %52 = tpu.matmul %50, %51, %cst_35 {dimension_numbers = #tpu.dot_dimension_numbers<[1], [0], [0], [1], [0, 0, 1, 1], [], []>} : vector<8x128xbf16>, vector<128x256xbf16>, vector<8x256xf32> -> vector<8x256xf32>
    %c0_36 = arith.constant 0 : index
    %c0_37 = arith.constant 0 : index
    %53 = vector.load %arg9[%c0_36, %c0_37] : memref<1x256xf32, #tpu.memory_space<vmem>>, vector<1x256xf32>
    %54 = vector.broadcast %53 : vector<1x256xf32> to vector<8x256xf32>
    %55 = arith.addf %52, %54 : vector<8x256xf32>
    %cst_38 = arith.constant 0.000000e+00 : f32
    %56 = vector.broadcast %cst_38 : f32 to vector<8x256xf32>
    %57 = arith.maximumf %55, %56 : vector<8x256xf32>
    %58 = arith.truncf %57 : vector<8x256xf32> to vector<8x256xbf16>
    %c0_39 = arith.constant 0 : index
    %c0_40 = arith.constant 0 : index
    %59 = vector.load %arg10[%c0_39, %c0_40] : memref<256x128xbf16, #tpu.memory_space<vmem>>, vector<256x128xbf16>
    %cst_41 = arith.constant dense<0.000000e+00> : vector<8x128xf32>
    %60 = tpu.matmul %58, %59, %cst_41 {dimension_numbers = #tpu.dot_dimension_numbers<[1], [0], [0], [1], [0, 0, 1, 1], [], []>} : vector<8x256xbf16>, vector<256x128xbf16>, vector<8x128xf32> -> vector<8x128xf32>
    %c0_42 = arith.constant 0 : index
    %c0_43 = arith.constant 0 : index
    %61 = vector.load %arg11[%c0_42, %c0_43] : memref<1x128xf32, #tpu.memory_space<vmem>>, vector<1x128xf32>
    %62 = vector.broadcast %61 : vector<1x128xf32> to vector<8x128xf32>
    %63 = arith.addf %60, %62 : vector<8x128xf32>
    %c0_44 = arith.constant 0 : index
    %c0_45 = arith.constant 0 : index
    %64 = vector.load %arg17[%c0_44, %c0_45] : memref<8x128xf32, #tpu.memory_space<vmem>>, vector<8x128xf32>
    tpu.vector_store %arg17[%c0_44, %c0_45], %63 {strides = array<i32>} : memref<8x128xf32, #tpu.memory_space<vmem>>, vector<8x128xf32>,
    %c0_46 = arith.constant 0 : index
    %c0_47 = arith.constant 0 : index
    %65 = vector.load %arg18[%c0_46, %c0_47] : memref<8x128xf32, #tpu.memory_space<vmem>>, vector<8x128xf32>
    tpu.vector_store %arg18[%c0_46, %c0_47], %42 {strides = array<i32>} : memref<8x128xf32, #tpu.memory_space<vmem>>, vector<8x128xf32>,
    %c0_48 = arith.constant 0 : index
    %c0_49 = arith.constant 0 : index
    %66 = vector.load %arg19[%c0_48, %c0_49] : memref<8x128xf32, #tpu.memory_space<vmem>>, vector<8x128xf32>
    tpu.vector_store %arg19[%c0_48, %c0_49], %43 {strides = array<i32>} : memref<8x128xf32, #tpu.memory_space<vmem>>, vector<8x128xf32>,
    return
  }
  func.func @transform_0(%arg0: i32) -> (i32, i32) {
    %c0_i32 = arith.constant 0 : i32
    %c0_i32_0 = arith.constant 0 : i32
    %c0_i32_1 = arith.constant 0 : i32
    return %c0_i32, %c0_i32_0 : i32, i32
  }
  func.func @transform_1(%arg0: i32) -> (i32, i32) {
    %c0_i32 = arith.constant 0 : i32
    %c0_i32_0 = arith.constant 0 : i32
    return %arg0, %c0_i32 : i32, i32
  }
  func.func @transform_2(%arg0: i32) -> (i32, i32) {
    %c0_i32 = arith.constant 0 : i32
    %c0_i32_0 = arith.constant 0 : i32
    %c0_i32_1 = arith.constant 0 : i32
    return %c0_i32, %c0_i32_0 : i32, i32
  }
  func.func @transform_3(%arg0: i32) -> (i32, i32) {
    %c0_i32 = arith.constant 0 : i32
    %c0_i32_0 = arith.constant 0 : i32
    %c0_i32_1 = arith.constant 0 : i32
    return %c0_i32, %c0_i32_0 : i32, i32
  }
  func.func @transform_4(%arg0: i32) -> (i32, i32) {
    %c0_i32 = arith.constant 0 : i32
    %c0_i32_0 = arith.constant 0 : i32
    %c0_i32_1 = arith.constant 0 : i32
    return %c0_i32, %c0_i32_0 : i32, i32
  }
  func.func @transform_5(%arg0: i32) -> (i32, i32) {
    %c0_i32 = arith.constant 0 : i32
    %c0_i32_0 = arith.constant 0 : i32
    %c0_i32_1 = arith.constant 0 : i32
    return %c0_i32, %c0_i32_0 : i32, i32
  }
  func.func @transform_6(%arg0: i32) -> (i32, i32) {
    %c0_i32 = arith.constant 0 : i32
    %c0_i32_0 = arith.constant 0 : i32
    %c0_i32_1 = arith.constant 0 : i32
    return %c0_i32, %c0_i32_0 : i32, i32
  }
  func.func @transform_7(%arg0: i32) -> (i32, i32) {
    %c0_i32 = arith.constant 0 : i32
    %c0_i32_0 = arith.constant 0 : i32
    %c0_i32_1 = arith.constant 0 : i32
    return %c0_i32, %c0_i32_0 : i32, i32
  }
  func.func @transform_8(%arg0: i32) -> (i32, i32) {
    %c0_i32 = arith.constant 0 : i32
    %c0_i32_0 = arith.constant 0 : i32
    %c0_i32_1 = arith.constant 0 : i32
    return %c0_i32, %c0_i32_0 : i32, i32
  }
  func.func @transform_9(%arg0: i32) -> (i32, i32) {
    %c0_i32 = arith.constant 0 : i32
    %c0_i32_0 = arith.constant 0 : i32
    %c0_i32_1 = arith.constant 0 : i32
    return %c0_i32, %c0_i32_0 : i32, i32
  }
  func.func @transform_10(%arg0: i32) -> (i32, i32) {
    %c0_i32 = arith.constant 0 : i32
    %c0_i32_0 = arith.constant 0 : i32
    %c0_i32_1 = arith.constant 0 : i32
    return %c0_i32, %c0_i32_0 : i32, i32
  }
  func.func @transform_11(%arg0: i32) -> (i32, i32) {
    %c0_i32 = arith.constant 0 : i32
    %c0_i32_0 = arith.constant 0 : i32
    return %arg0, %c0_i32 : i32, i32
  }
  func.func @transform_12(%arg0: i32) -> (i32, i32) {
    %c0_i32 = arith.constant 0 : i32
    %c0_i32_0 = arith.constant 0 : i32
    %c0_i32_1 = arith.constant 0 : i32
    return %c0_i32, %c0_i32_0 : i32, i32
  }
  func.func @transform_13(%arg0: i32) -> (i32, i32) {
    %c0_i32 = arith.constant 0 : i32
    %c0_i32_0 = arith.constant 0 : i32
    return %arg0, %c0_i32 : i32, i32
  }
  func.func @transform_14(%arg0: i32) -> (i32, i32) {
    %c0_i32 = arith.constant 0 : i32
    %c0_i32_0 = arith.constant 0 : i32
    return %arg0, %c0_i32 : i32, i32
  }
  func.func @transform_15(%arg0: i32) -> (i32, i32) {
    %c0_i32 = arith.constant 0 : i32
    %c0_i32_0 = arith.constant 0 : i32
    return %arg0, %c0_i32 : i32, i32
  }
  func.func @transform_16(%arg0: i32) -> (i32, i32) {
    %c0_i32 = arith.constant 0 : i32
    %c0_i32_0 = arith.constant 0 : i32
    return %arg0, %c0_i32 : i32, i32
  }
  func.func @transform_17(%arg0: i32) -> (i32, i32) {
    %c0_i32 = arith.constant 0 : i32
    %c0_i32_0 = arith.constant 0 : i32
    return %arg0, %c0_i32 : i32, i32
  }
  func.func @transform_18(%arg0: i32) -> (i32, i32) {
    %c0_i32 = arith.constant 0 : i32
    %c0_i32_0 = arith.constant 0 : i32
    return %arg0, %c0_i32 : i32, i32
  }
}

</mosaic_0001>

<bundles_post_ra>
// kernel: tpu_custom_call.1
= control target key start
LH: loop header
LB: loop body
LE: loop exit
PB: predicated region body
PF: predicated region fallthrough
CT: control target
= control target key end

     0   :  { %s3352_s0 = inlined_call_operand.hbm [shape: f32[8,128], index: 0, kind: input, shape index: {}]   ;;  %s3353_s1 = inlined_call_operand.hbm [shape: f32[16,128], index: 1, kind: input, shape index: {}]   ;;  %s3354_s2 = inlined_call_operand.hbm [shape: f32[1,8], index: 2, kind: input, shape index: {}]   ;;  %s3355_s3 = inlined_call_operand.hbm [shape: bf16[128,256], index: 3, kind: input, shape index: {}]   ;;  %s3356_s4 = inlined_call_operand.vmem [shape: f32[1,256], index: 4, kind: input, shape index: {}]   ;;  %s3357_s5 = inlined_call_operand.hbm [shape: bf16[256,256], index: 5, kind: input, shape index: {}]   ;;  %s3358_s6 = inlined_call_operand.vmem [shape: f32[1,256], index: 6, kind: input, shape index: {}]   ;;  %s3359_s7 = inlined_call_operand.hbm [shape: bf16[128,256], index: 7, kind: input, shape index: {}]   ;;  %s3360_s8 = inlined_call_operand.hbm [shape: f32[1,256], index: 8, kind: input, shape index: {}]   ;;  %s3361_s9 = inlined_call_operand.hbm [shape: bf16[256,128], index: 9, kind: input, shape index: {}]   ;;  %s3362_s10 = inlined_call_operand.hbm [shape: f32[1,128], index: 10, kind: input, shape index: {}]   ;;  %s3363_s11 = inlined_call_operand.vmem [shape: f32[16,128], index: 11, kind: input, shape index: {}]   ;;  %s3364_s12 = inlined_call_operand.hbm [shape: f32[8,128], index: 12, kind: output, shape index: {0}]   ;;  %s3365_s13 = inlined_call_operand.hbm [shape: f32[16,128], index: 13, kind: output, shape index: {1}]   ;;  %s3366_s14 = inlined_call_operand.vmem [shape: f32[16,8], index: 14, kind: output, shape index: {2}]   ;;  %s3367_s15 = inlined_call_operand.vmem [shape: f32[16,8], index: 15, kind: output, shape index: {3}]   ;;  %s3368_s16 = inlined_call_operand.hbm [shape: f32[16,128], index: 16, kind: output, shape index: {4}]   ;;  %s3369_s17 = inlined_call_operand.hbm [shape: f32[16,128], index: 17, kind: output, shape index: {5}]   ;;  %s3370_s18 = inlined_call_operand.hbm [shape: f32[16,128], index: 18, kind: output, shape index: {6}]  }
   0x1   :  { %3387 = sst [smem:[#allocation35_spill]] %s3352_s0 }
   0x2   :  { %3388 = sst [smem:[#allocation36_spill]] %s3353_s1 }
   0x3   :  { %3389 = sst [smem:[#allocation37_spill]] %s3354_s2 }
   0x4   :  { %3390 = sst [smem:[#allocation38_spill]] %s3355_s3 }
   0x5   :  { %3391 = sst [smem:[#allocation39_spill]] %s3357_s5 }
   0x6   :  { %3392 = sst [smem:[#allocation40_spill]] %s3359_s7 }
   0x7   :  { %3393 = sst [smem:[#allocation41_spill]] %s3360_s8 }
   0x8   :  { %3394 = sst [smem:[#allocation42_spill]] %s3361_s9 }
   0x9   :  { %3395 = sst [smem:[#allocation43_spill]] %s3362_s10 }
   0xa   :  { %3396 = sst [smem:[#allocation44_spill]] %s3368_s16 }
   0xb   :  { %3397 = sst [smem:[#allocation45_spill]] %s3370_s18 }
   0xc   :  { %24 = vsyncpa [#allocation3], 0 }
   0xd   :  { %25 = vsyncpa [#allocation6], 0 }
   0xe   :  { %27 = vsyncpa [#allocation6 + $0x1], 0 }
   0xf   :  { %28 = vsyncpa [#allocation9], 0 }
  0x10   :  { %29 = vsyncpa [#allocation12], 0 }
  0x11   :  { %30 = vsyncpa [#allocation15], 0 }
  0x12   :  { %31 = vsyncpa [#allocation4], 0 }
  0x13   :  { %32 = vsyncpa [#allocation19], 0 }
  0x14   :  { %34 = vsyncpa [#allocation19 + $0x1], 0 }
  0x15   :  { %35 = vsyncpa [#allocation22], 0 }
  0x16   :  { %37 = vsyncpa [#allocation22 + $0x1], 0  ;;  %s2976_s27 = smov 0   ;;  %s2978_s28 = smov 0  }
  0x17   :  { %s2980_s29 = smov 0   ;;  %s2982_s30 = smov 0  }
  0x18 LB: > { %3398 = sst [smem:[#allocation33_spill]] %s2854_s29  ;;  %s2860_s0 = smov [#allocation7]   ;;  %s2858_s30 = sphi %s2982_s30, %s3450_s30   ;;  %s2854_s29 = sphi %s2980_s29, %s3447_s29   ;;  %s2850_s28 = sphi %s2978_s28, %s3449_s28   ;;  %s2846_s27 = sphi %s2976_s27, %s3448_s27  }
  0x19   : > { %s511_s19 = sshll.u32 %s2860_s0, 4  ;;  %s2997_s1 = sadd.s32 4294967295, %s2858_s30   ;;  %s512_s19 = int_to_ptr.vmem [resolvable:$true] %s511_s19 }
  0x1a   : > { %p2001_p0 = scmp.ge.s32.totalorder %s2858_s30, 1  ;;  %p3376_p1 = scmp.eq.s32.totalorder %s2997_s1, 0 }
  0x1b   : > { %p487_p2 = scmp.lt.s32.totalorder %s2858_s30, 3  ;;  %s2861_s21 = smov [#allocation8]  }
  0x1c   : > { %s521_s22 = sshll.u32 %s2861_s21, 4  ;;  %s2862_s23 = smov [#allocation11]   ;;  %s3009_s22 = int_to_ptr.vmem [resolvable:$true] %s521_s22 }
  0x1d   : > { %p3002_p3 = pnand %p2001_p0, %p487_p2  ;;  %s553_s24 = sshll.u32 %s2862_s23, 4  ;;  %s3017_s24 = int_to_ptr.vmem [resolvable:$true] %s553_s24 }
  0x1e   : > { %s2439_s26 = scalar_lea.vmem %s512_s19, 16  ;;  %s2446_s0 = scalar_lea.vmem %s512_s19, 32 }
  0x1f   : > { %s3399_s20 = scalar_select %p3002_p3, 1, 0 }
  0x20   : > { %p2198_p5 = pneg %p3002_p3  ;;  %p2440_p8 = scmp.ne.s32.totalorder %s512_s19, %s2439_s26 }
  0x21   : > { %p2447_p11 = scmp.lt.s32.totalorder %s512_s19, %s512_s19  ;;  %p2448_p12 = scmp.lt.s32.totalorder %s2446_s0, %s2439_s26 }
  0x22   : > { %p3013_p6 = pnand %p2198_p5, %p3376_p1 }
  0x23   : > { %p2449_p13 = por %p2448_p12, %p2447_p11 }
  0x24   : > { %p3021_p7 = pneg %p3013_p6 }
  0x26   : > { %p2442_p9 = pnand %p2440_p8, %p3021_p7 }
  0x28   : > { %p2443_p10 = pneg %p2442_p9 }
  0x2a   : > { %p2450_p0 = pnand %p2449_p13, %p2443_p10 }
  0x2c   : > { %2453 = shalt.err (!%p2450_p0)
}
  0x2d   : > { %s3402_s16 = sld [smem:[#allocation37_spill]]  ;;  %s2465_s18 = scalar_lea.vmem %s3009_s22, 2048 }
  0x2e   : > { %p2466_p2 = scmp.ne.s32.totalorder %s3009_s22, %s2465_s18  ;;  %p2473_p9 = scmp.lt.s32.totalorder %s3009_s22, %s3009_s22 }
  0x2f   : > { %p2474_p11 = scmp.lt.s32.totalorder %s2465_s18, %s2465_s18 }
  0x30   : > { %p2468_p5 = pnand %p2466_p2, %p3021_p7 }
  0x31   : > { %p2475_p10 = por %p2474_p11, %p2473_p9 }
  0x32   : > { %p2469_p8 = pneg %p2468_p5 }
  0x33   : > { %2204 = dma.hbm_to_vmem [thread:$0]  (!%p3013_p6), %s3402_s16, 16, %s512_s19, [#allocation6]  }
  0x34   : > { %p2476_p12 = pnand %p2475_p10, %p2469_p8 }
  0x36   : > { %2479 = shalt.err (!%p2476_p12)
}
  0x37   : > { %s3374_s26 = smov 128   ;;  %s3375_s0 = smov 8  }
  0x38   : > { %s3403_s3 = sld [smem:[#allocation38_spill]]  ;;  %s2491_s18 = scalar_lea.vmem %s3017_s24, 2048 }
  0x39   : > { %p2492_p13 = scmp.ne.s32.totalorder %s3017_s24, %s2491_s18  ;;  %p2499_p5 = scmp.lt.s32.totalorder %s3017_s24, %s3017_s24 }
  0x3a   : > { %p2500_p8 = scmp.lt.s32.totalorder %s2491_s18, %s2491_s18 }
  0x3b   : > { %p2494_p0 = pnand %p2492_p13, %p3021_p7 }
  0x3c   : > { %p2501_p9 = por %p2500_p8, %p2499_p5 }
  0x3d   : > { %p2495_p2 = pneg %p2494_p0 }
  0x3e   : > { %2207 = dma.hbm_to_vmem [thread:$0]  (!%p3013_p6), %s3403_s3, 2048, %s3009_s22, [#allocation9], %s3374_s26, %s3374_s26, %s3375_s0  }
  0x3f   : > { %p2502_p11 = pnand %p2501_p9, %p2495_p2 }
  0x41   : > { %2505 = shalt.err (!%p2502_p11)
}
  0x42   : > { %s3404_s7 = sld [smem:[#allocation40_spill]]  ;;  %s2865_s22 = smov [#allocation14]  }
  0x43   : > { %s577_s16 = sshll.u32 %s2865_s22, 4  ;;  %s578_s16 = int_to_ptr.vmem [resolvable:$true] %s577_s16 }
  0x44   : > { %s2517_s19 = scalar_lea.vmem %s578_s16, 2048  ;;  %p2525_p0 = scmp.lt.s32.totalorder %s578_s16, %s578_s16 }
  0x45   : > { %p2518_p10 = scmp.ne.s32.totalorder %s578_s16, %s2517_s19  ;;  %p2526_p2 = scmp.lt.s32.totalorder %s2517_s19, %s2517_s19 }
  0x47   : > { %p2520_p12 = pnand %p2518_p10, %p3021_p7  ;;  %p2527_p5 = por %p2526_p2, %p2525_p0 }
  0x48   : > { %2213 = dma.hbm_to_vmem [thread:$0]  (!%p3013_p6), %s3404_s7, 2048, %s3017_s24, [#allocation12], %s3374_s26, %s3374_s26, %s3375_s0  }
  0x49   : > { %p2521_p13 = pneg %p2520_p12 }
  0x4b   : > { %p2528_p8 = pnand %p2527_p5, %p2521_p13 }
  0x4d   : > { %2531 = shalt.err (!%p2528_p8)
}
  0x4e   : > { %s2866_s18 = smov 64   ;;  %s2867_s3 = smov 4  }
  0x4f   : > { %s3405_s9 = sld [smem:[#allocation42_spill]]  ;;  %s2868_s23 = smov [#allocation2]  }
  0x50   : > { %s500_s22 = sshll.u32 %s2868_s23, 4  ;;  %s2869_s26 = smov [#allocation10]   ;;  %s501_s22 = int_to_ptr.vmem [resolvable:$true] %s500_s22 }
  0x51   : > { %s537_s0 = sshll.u32 %s2869_s26, 4  ;;  %s2543_s7 = scalar_lea.vmem %s501_s22, 128  ;;  %s538_s0 = int_to_ptr.vmem [resolvable:$true] %s537_s0 }
  0x52   : > { %p2544_p9 = scmp.ne.s32.totalorder %s501_s22, %s2543_s7  ;;  %p2551_p12 = scmp.lt.s32.totalorder %s501_s22, %s501_s22 }
  0x53   : > { %p2552_p13 = scmp.lt.s32.totalorder %s2543_s7, %s2543_s7 }
  0x54   : > { %p2546_p11 = pnand %p2544_p9, %p3021_p7 }
  0x55   : > { %2219 = dma.hbm_to_vmem [thread:$0]  (!%p3013_p6), %s3405_s9, 2048, %s578_s16, [#allocation15], %s2866_s18, %s2866_s18, %s2867_s3  }
  0x56   : > { %p2547_p10 = pneg %p2546_p11  ;;  %p2553_p0 = por %p2552_p13, %p2551_p12 }
  0x58   : > { %p2554_p2 = pnand %p2553_p0, %p2547_p10 }
  0x5a   : > { %2557 = shalt.err (!%p2554_p2)
}
  0x5b   : > { %s3406_s16 = sld [smem:[#allocation35_spill]]  ;;  %s2569_s26 = scalar_lea.vmem %s538_s0, 4096 }
  0x5c   : > { %p2570_p5 = scmp.ne.s32.totalorder %s538_s0, %s2569_s26  ;;  %p2577_p1 = scmp.lt.s32.totalorder %s538_s0, %s538_s0 }
  0x5d   : > { %p2578_p9 = scmp.lt.s32.totalorder %s2569_s26, %s2569_s26 }
  0x5e   : > { %p2572_p8 = pnand %p2570_p5, %p3021_p7 }
  0x5f   : > { %p2579_p11 = por %p2578_p9, %p2577_p1 }
  0x60   : > { %p2573_p4 = pneg %p2572_p8 }
  0x61   : > { %2201 = dma.hbm_to_vmem [thread:$0]  (!%p3013_p6), %s3406_s16, 128, %s501_s22, [#allocation3]  }
  0x62   : > { %p2580_p3 = pnand %p2579_p11, %p2573_p4 }
  0x64   : > { %2583 = shalt.err (!%p2580_p3)
}
  0x65   : > { %s3407_s7 = smov 8   ;;  %s3408_s18 = smov 128  }
  0x66   : > { %s3409_s5 = sld [smem:[#allocation39_spill]]  ;;  %s2870_s23 = smov [#allocation13]  }
  0x67   : > { %s567_s22 = sshll.u32 %s2870_s23, 4  ;;  %s2871_s19 = smov [#allocation16]   ;;  %s568_s22 = int_to_ptr.vmem [resolvable:$true] %s567_s22 }
  0x68   : > { %s591_s3 = sshll.u32 %s2871_s19, 4  ;;  %s2595_s16 = scalar_lea.vmem %s568_s22, 32  ;;  %s592_s3 = int_to_ptr.vmem [resolvable:$true] %s591_s3 }
  0x69   : > { %p2596_p1 = scmp.ne.s32.totalorder %s568_s22, %s2595_s16  ;;  %p2603_p10 = scmp.lt.s32.totalorder %s568_s22, %s568_s22 }
  0x6a   : > { %p2604_p12 = scmp.lt.s32.totalorder %s2595_s16, %s2595_s16 }
  0x6b   : > { %p2598_p3 = pnand %p2596_p1, %p3021_p7 }
  0x6c   : > { %2210 = dma.hbm_to_vmem [thread:$0]  (!%p3013_p6), %s3409_s5, 4096, %s538_s0, [#allocation9], %s3408_s18, %s3408_s18, %s3407_s7  }
  0x6d   : > { %p2599_p4 = pneg %p2598_p3  ;;  %p2605_p13 = por %p2604_p12, %p2603_p10 }
  0x6f   : > { %p2606_p0 = pnand %p2605_p13, %p2599_p4 }
  0x71   : > { %2609 = shalt.err (!%p2606_p0)
}
  0x72   : > { %s3410_s8 = sld [smem:[#allocation41_spill]]  ;;  %s2621_s7 = scalar_lea.vmem %s592_s3, 16 }
  0x73   : > { %p2622_p2 = scmp.ne.s32.totalorder %s592_s3, %s2621_s7  ;;  %s2628_s18 = scalar_lea.vmem %s592_s3, 32 }
  0x74   : > { %p2629_p9 = scmp.lt.s32.totalorder %s592_s3, %s592_s3  ;;  %p2630_p11 = scmp.lt.s32.totalorder %s2628_s18, %s2621_s7 }
  0x75   : > { %p2624_p5 = pnand %p2622_p2, %p3021_p7 }
  0x76   : > { %p2631_p1 = por %p2630_p11, %p2629_p9 }
  0x77   : > { %p2625_p8 = pneg %p2624_p5 }
  0x78   : > { %2216 = dma.hbm_to_vmem [thread:$0]  (!%p3013_p6), %s3410_s8, 32, %s568_s22, [#allocation12]  }
  0x79   : > { %p2632_p3 = pnand %p2631_p1, %p2625_p8 }
  0x7b   : > { %2635 = shalt.err (!%p2632_p3)
}
  0x7c   : > { %s3411_s10 = sld [smem:[#allocation43_spill]]  ;;  %s3378_s2 = sadd.s32 4294967294, %s2858_s30  }
  0x7d   : > { %s3102_s25 = sadd.s32 1, %s2858_s30   ;;  %s71_s22 = sadd.s32 1, %s2854_s29 }
  0x7e   : > { %s68_s23 = ssub.s32 %s2858_s30, %s3102_s25  ;;  %p78_p4 = scmp.ne.s32.totalorder %s2854_s29, %s2850_s28 }
  0x7f   : > { %p69_p7 = scmp.eq.s32.totalorder %s68_s23, 0  ;;  %p79_p10 = scmp.eq.s32.totalorder %s2858_s30, 0 }
  0x80   : > { %p84_p12 = scmp.ne.s32.totalorder %s2850_s28, %s2846_s27  ;;  %p3379_p2 = scmp.eq.s32.totalorder %s2997_s1, 1 }
  0x81   : > { %s3113_s19 = scalar_select %p69_p7, %s2854_s29, %s71_s22  }
  0x82   : > { %2222 = dma.hbm_to_vmem [thread:$0]  (!%p3013_p6), %s3411_s10, 16, %s592_s3, [#allocation15]  }
  0x83   : > { %3412 = sst [smem:[#allocation34_spill]] %s3113_s19  ;;  %p3115_p13 = por %p79_p10, %p78_p4 }
  0x84   : > { %p3414_p6 = scmp.eq.s32.totalorder %s2997_s1, 0  ;;  %p350_p5 = scmp.eq.s32.totalorder %s3378_s2, 1 }
  0x85   : > { %p2248_p8 = scmp.lt.s32.totalorder %s2858_s30, 2  ;;  %s602_s26 = sand.u32 1, %s2858_s30  }
  0x86   : > { %p3121_p0 = por %p3414_p6, %p84_p12  ;;  %p3132_p9 = por %p3379_p2, %p78_p4 }
  0x87   : > { %p3136_p11 = por %p350_p5, %p84_p12  ;;  %s604_s7 = sand.u32 1, %s2854_s29  }
  0x88   : > { %s3415_s3 = scalar_select %p3121_p0, 1, 0 }
  0x89   : > { %s3416_s27 = scalar_select %p3132_p9, 1, 0 }
  0x8a   : > { %s3417_s0 = scalar_select %p3136_p11, 1, 0 }
  0x8b   : > { %s2011_s18 = sshll.u32 %s604_s7, 3  ;;  %s2012_s21 = sshll.u32 %s2858_s30, 7 }
  0x8c   : > { %s3418_s22 = sld [smem:[#allocation36_spill]]  ;;  %s606_s2 = scalar_lea.vmem [#allocation5], %s2011_s18 }
  0x8d   : > { %s613_s8 = sshll.u32 %s606_s2, 4  ;;  %p3149_p1 = pnand %p2248_p8, %p3115_p13  ;;  %s614_s8 = int_to_ptr.vmem [resolvable:$true] %s613_s8 }
  0x8e   : > { %s603_s10 = scalar_lea.sflag [#allocation6], %s602_s26 }
  0x8f   : > { %p2638_p7 = pneg %p3149_p1 }
  0x92   : > { %s3145_s5 = scalar_lea.hbm %s3418_s22, %s2012_s21  ;;  %s2641_s23 = scalar_lea.hbm %s3418_s22, 256 }
  0x93   : > { %s2636_s7 = scalar_lea.hbm %s3145_s5, 128  ;;  %p2642_p12 = scmp.lt.s32.totalorder %s3145_s5, %s3418_s22 }
  0x94   : > { %p2637_p3 = scmp.ne.s32.totalorder %s3145_s5, %s2636_s7  ;;  %p2643_p13 = scmp.lt.s32.totalorder %s2641_s23, %s2636_s7 }
  0x96   : > { %p2639_p4 = pnand %p2638_p7, %p2637_p3  ;;  %p2644_p6 = por %p2643_p13, %p2642_p12 }
  0x98   : > { %p2640_p10 = pneg %p2639_p4 }
  0x9a   : > { %p2645_p5 = pnand %p2644_p6, %p2640_p10 }
  0x9c   : > { %2648 = shalt.err (!%p2645_p5)
}
  0x9d   : > { %s2649_s16 = scalar_lea.vmem %s614_s8, 128  ;;  %s2872_s26 = smov [#allocation5]  }
  0x9e   : > { %p2650_p8 = scmp.ne.s32.totalorder %s614_s8, %s2649_s16  ;;  %s2654_s19 = sshll.u32 %s2872_s26, 4  ;;  %s2655_s19 = int_to_ptr.vmem [resolvable:$false] %s2654_s19 }
  0x9f   : > { %s2656_s29 = scalar_lea.vmem %s2655_s19, 256  ;;  %p2657_p3 = scmp.lt.s32.totalorder %s614_s8, %s2655_s19 }
  0xa0   : > { %p2652_p2 = pnand %p2650_p8, %p2638_p7  ;;  %p2658_p4 = scmp.lt.s32.totalorder %s2656_s29, %s2649_s16 }
  0xa2   : > { %p2653_p11 = pneg %p2652_p2  ;;  %p2659_p9 = por %p2658_p4, %p2657_p3 }
  0xa4   : > { %p2660_p0 = pnand %p2659_p9, %p2653_p11 }
  0xa6   : > { %2663 = shalt.err (!%p2660_p0)
}
  0xa7   : > { %2226 = dma.hbm_to_vmem [thread:$0]  (!%p3149_p1), %s3145_s5, 128, %s614_s8, %s603_s10  }
  0xa8   : > { %p3420_p10 = scmp.ne.s32.totalorder %s3399_s20, 0 }
  0xa9   : > { %p3421_p12 = scmp.eq.s32.totalorder (!%p3420_p10), %s2997_s1, 0 }
  0xaa   : > { %629 = sbr.rel (%p3420_p10) target bundleno = 1067 (0x42b), region = 68 }
  0xaf   : > { %2809 = dma.done.wait (%p3421_p12), [#allocation3], 128   ;;  %p3422_p2 = pmov %p3421_p12 }
  0xb0   : > { %s3174_s29 = sand.u32 1, %s2997_s1   ;;  %s637_s19 = sand.u32 1, %s2850_s28  }
  0xb1   : > { %2811 = vsyncadd (%p3422_p2), [#allocation3], 4294967168  ;;  %s3177_s7 = sshll.u32 %s637_s19, 3  ;;  %s636_s5 = scalar_lea.sflag [#allocation6], %s3174_s29 }
  0xb2   : > { %s639_s8 = scalar_lea.vmem [#allocation5], %s3177_s7  ;;  %p3423_p0 = scmp.ne.s32.totalorder %s3415_s3, 0 }
  0xb4   : > { %2813 = dma.done.wait (%p3423_p0), %s636_s5, 128  }
  0xb5   : > { %2815 = vsyncadd (%p3423_p0), %s636_s5, 4294967168  ;;  %p3424_p9 = pmov %p3422_p2 }
  0xb6   : > { %p3425_p11 = pmov %p3422_p2 }
  0xb7   : > { %2817 = dma.done.wait (%p3424_p9), [#allocation6], 16  }
  0xb8   : > { %2819 = vsyncadd (%p3425_p11), [#allocation6], 4294967280  ;;  %p3426_p1 = pmov %p3422_p2 }
  0xba   : > { %2821 = dma.done.wait (%p3426_p1), [#allocation9], 6144   ;;  %p3427_p7 = pmov %p3426_p1 }
  0xbb   : > { %p3428_p13 = pmov %p3426_p1 }
  0xbc   : > { %2823 = vsyncadd (%p3427_p7), [#allocation9], 4294961152 }
  0xbd   : > { %2825 = dma.done.wait (%p3428_p13), [#allocation12], 2080   ;;  %p3429_p6 = pmov %p3426_p1 }
  0xbe   : > { %p3430_p5 = pmov %p3426_p1 }
  0xbf   : > { %2827 = vsyncadd (%p3429_p6), [#allocation12], 4294965216 }
  0xc0   : > { %2829 = dma.done.wait (%p3430_p5), [#allocation15], 2064   ;;  %p3431_p8 = pmov %p3426_p1 }
  0xc1   : > { %v2873_v0 = vmov 0   ;;  %v2308_v1 = vld [vmem:[#allocation8 + $0x74] ss:$8 sps:$4 sm:$0xff]   ;;  %v2310_v2 = vld [vmem:[#allocation8 + $0x70] ss:$8 sps:$4 sm:$0xff]   ;;  %v760_v6 = vld [vmem:[#allocation2] sm:$0xff]  ;;  %v851_v56 = vlaneseq }
  0xc2   : > { %2831 = vsyncadd (%p3431_p8), [#allocation15], 4294965232  ;;  %1000 = vmatprep.mubr.bf16.mxu1 %v2873_v0  ;;  %968 = vmatprep.subr.bf16.mxu1 %v2308_v1  ;;  %v2311_v3 = vld [vmem:[#allocation8 + $0x64] ss:$8 sps:$4 sm:$0xff]   ;;  %v2313_v4 = vld [vmem:[#allocation8 + $0x60] ss:$8 sps:$4 sm:$0xff]   ;;  %v761_v7 = vmul.f32 %v760_v6, %v760_v6 }
  0xc3   : > { %969 = vmatpush1.bf16.msra.mxu1 %v2310_v2  ;;  %v2314_v5 = vld [vmem:[#allocation8 + $0x54] ss:$8 sps:$4 sm:$0xff]   ;;  %v2316_v9 = vld [vmem:[#allocation8 + $0x50] ss:$8 sps:$4 sm:$0xff]   ;;  %v2317_v11 = vld [vmem:[#allocation8 + $0x44] ss:$8 sps:$4 sm:$0xff]  }
  0xc4   : > { %970 = vmatprep.subr.bf16.mxu1 %v2311_v3  ;;  %v767_v8 = vld [vmem:[%s639_s8] sm:$0xff]  ;;  %762 = vadd.xlane.f32.xlu0 %v761_v7  ;;  %v2319_v12 = vld [vmem:[#allocation8 + $0x40] ss:$8 sps:$4 sm:$0xff]   ;;  %v2874_v20 = vmov 0.0   ;;  %vm2875_vm0 = vmmov 0   ;;  %s713_s9 = scalar_lea.vmem [#allocation18], %s3177_s7 }
  0xc5   : > { %v768_v10 = vmul.f32 %v767_v8, %v767_v8  ;;  %v2320_v13 = vld [vmem:[#allocation8 + $0x34] ss:$8 sps:$4 sm:$0xff]   ;;  %v2322_v14 = vld [vmem:[#allocation8 + $0x30] ss:$8 sps:$4 sm:$0xff]   ;;  %v2323_v15 = vld [vmem:[#allocation8 + $0x24] ss:$8 sps:$4 sm:$0xff]   ;;  %2147 = vmatprep.subr.mxu0 %v2874_v20  ;;  %v859_v22 = vpack.c.bf16 %v767_v8, %v767_v8  ;;  %2149 = vmatprep.mubr.msk.f32.mxu0 %vm2875_vm0, %v2874_v20 }
  0xc6   : > { %v2325_v16 = vld [vmem:[#allocation8 + $0x20] ss:$8 sps:$4 sm:$0xff]   ;;  %v2326_v17 = vld [vmem:[#allocation8 + $0x14] ss:$8 sps:$4 sm:$0xff]   ;;  %v2328_v18 = vld [vmem:[#allocation8 + $0x10] ss:$8 sps:$4 sm:$0xff]  }
  0xc7   : > { %971 = vmatpush1.bf16.msra.mxu1 %v2313_v4  ;;  %v2329_v19 = vld [vmem:[#allocation8 + $0x4] ss:$8 sps:$4 sm:$0xff]   ;;  %v2331_v21 = vld [vmem:[#allocation8] ss:$8 sps:$4 sm:$0xff]   ;;  %v2334_v28 = vld [vmem:[#allocation10 + $0x74] ss:$8 sps:$4 sm:$0xff]  }
  0xc8   : > { %972 = vmatprep.subr.bf16.mxu1 %v2314_v5  ;;  %769 = vadd.xlane.f32.xlu0 %v768_v10  ;;  %v2332_v31 = vld [vmem:[#allocation10 + $0x70] ss:$8 sps:$4 sm:$0xff]   ;;  %v2337_v33 = vld [vmem:[#allocation10 + $0x64] ss:$8 sps:$4 sm:$0xff]   ;;  %v2335_v34 = vld [vmem:[#allocation10 + $0x60] ss:$8 sps:$4 sm:$0xff]  }
  0xc9   : > { %v2340_v35 = vld [vmem:[#allocation10 + $0x54] ss:$8 sps:$4 sm:$0xff]   ;;  %v2338_v36 = vld [vmem:[#allocation10 + $0x50] ss:$8 sps:$4 sm:$0xff]   ;;  %v2343_v37 = vld [vmem:[#allocation10 + $0x44] ss:$8 sps:$4 sm:$0xff]  }
  0xca   : > { %v2341_v38 = vld [vmem:[#allocation10 + $0x40] ss:$8 sps:$4 sm:$0xff]   ;;  %v2346_v39 = vld [vmem:[#allocation10 + $0x34] ss:$8 sps:$4 sm:$0xff]   ;;  %v2344_v40 = vld [vmem:[#allocation10 + $0x30] ss:$8 sps:$4 sm:$0xff]  }
  0xcb   : > { %973 = vmatpush1.bf16.msra.mxu1 %v2316_v9  ;;  %v2349_v41 = vld [vmem:[#allocation10 + $0x24] ss:$8 sps:$4 sm:$0xff]   ;;  %v2347_v42 = vld [vmem:[#allocation10 + $0x20] ss:$8 sps:$4 sm:$0xff]   ;;  %v2352_v43 = vld [vmem:[#allocation10 + $0x14] ss:$8 sps:$4 sm:$0xff]  }
  0xcc   : > { %974 = vmatprep.subr.bf16.mxu1 %v2317_v11  ;;  %v2350_v44 = vld [vmem:[#allocation10 + $0x10] ss:$8 sps:$4 sm:$0xff]   ;;  %v2355_v45 = vld [vmem:[#allocation10 + $0x4] ss:$8 sps:$4 sm:$0xff]   ;;  %v2353_v46 = vld [vmem:[#allocation10] ss:$8 sps:$4 sm:$0xff]  }
  0xcd   : > { %v2358_v47 = vld [vmem:[#allocation10 + $0xf4] ss:$8 sps:$4 sm:$0xff]   ;;  %v2356_v48 = vld [vmem:[#allocation10 + $0xf0] ss:$8 sps:$4 sm:$0xff]   ;;  %v2361_v49 = vld [vmem:[#allocation10 + $0xe4] ss:$8 sps:$4 sm:$0xff]  }
  0xce   : > { %v2359_v50 = vld [vmem:[#allocation10 + $0xe0] ss:$8 sps:$4 sm:$0xff]   ;;  %v2364_v51 = vld [vmem:[#allocation10 + $0xd4] ss:$8 sps:$4 sm:$0xff]   ;;  %v2362_v52 = vld [vmem:[#allocation10 + $0xd0] ss:$8 sps:$4 sm:$0xff]  }
  0xcf   : > { %975 = vmatpush1.bf16.msra.mxu1 %v2319_v12  ;;  %v2367_v53 = vld [vmem:[#allocation10 + $0xc4] ss:$8 sps:$4 sm:$0xff]   ;;  %v2365_v54 = vld [vmem:[#allocation10 + $0xc0] ss:$8 sps:$4 sm:$0xff]   ;;  %v2370_v55 = vld [vmem:[#allocation10 + $0xb4] ss:$8 sps:$4 sm:$0xff]  }
  0xd0   : > { %976 = vmatprep.subr.bf16.mxu1 %v2320_v13  ;;  %v2368_v57 = vld [vmem:[#allocation10 + $0xb0] ss:$8 sps:$4 sm:$0xff]   ;;  %v2373_v58 = vld [vmem:[#allocation10 + $0xa4] ss:$8 sps:$4 sm:$0xff]   ;;  %v852_v59 = vshrl.u32 %v851_v56, 7  ;;  %p747_p3 = scmp.lt.s32.totalorder %s2997_s1, 1 }
  0xd1   : > { %v2371_v60 = vld [vmem:[#allocation10 + $0xa0] ss:$8 sps:$4 sm:$0xff]   ;;  %v2376_v61 = vld [vmem:[#allocation10 + $0x94] ss:$8 sps:$4 sm:$0xff]   ;;  %v876_v63 = vld [vmem:[%s3356_s4] sm:$0x3] }
  0xd2   : > { %v3204_v62 = vsub.s32 0, %v852_v59  ;;  %v3209_v1 = vsub.s32 1, %v852_v59  ;;  %v2379_v2 = vld [vmem:[#allocation10 + $0x84] ss:$8 sps:$4 sm:$0xff]   ;;  %v2377_v4 = vld [vmem:[#allocation10 + $0x80] ss:$8 sps:$4 sm:$0xff]  }
  0xd3   : > { %977 = vmatpush1.bf16.msra.mxu1 %v2322_v14  ;;  %v2388_v20 = vld [vmem:[#allocation11 + $0x54] ss:$8 sps:$4 sm:$0xff]   ;;  %s748_s3 = scalar_select %p747_p3, %s2997_s1, 1  ;;  %vm846_vm1 = vcmask 64512   ;;  %v2409_v59 = vld [vmem:[#allocation14 + $0x28] sm:$0xff]  }
  0xd4   : > { %978 = vmatprep.subr.bf16.mxu1 %v2323_v15  ;;  %v881_v3 = vrot.slane %v876_v63, %v3204_v62  ;;  %v885_v5 = vrot.slane %v876_v63, %v3209_v1  ;;  %s3384_s8 = scalar_lea.vmem [#allocation21], %s3177_s7  ;;  %s3383_s10 = scalar_lea.vmem [#allocation23], %s3177_s7  ;;  %v2406_v56 = vld [vmem:[#allocation14 + $0x70] sm:$0xff]   ;;  %v2412_v63 = vld [vmem:[#allocation14 + $0x58] sm:$0xff]  }
  0xd5   : > { %s2027_s21 = sshll.u32 %s748_s3, 3  ;;  %s1644_s23 = sshll.u32 %s713_s9, 4  ;;  %s1645_s23 = int_to_ptr.vmem [resolvable:$true] %s1644_s23 }
  0xd6   : > { %s758_s18 = scalar_lea.vmem %s3367_s15, %s2027_s21  ;;  %s754_s26 = scalar_lea.vmem %s3366_s14, %s2027_s21 }
  0xd7   : > { %979 = vmatpush1.bf16.msra.mxu1 %v2325_v16  ;;  %v2380_v16 = vld [vmem:[#allocation11 + $0x70] ss:$8 sps:$4 sm:$0xff]   ;;  %s750_s24 = scalar_lea.vmem %s3363_s11, %s2027_s21  ;;  %s3239_s21 = sshll.u32 %s2997_s1, 7 }
  0xd8   : > { %980 = vmatprep.subr.bf16.mxu1 %v2326_v17  ;;  %v2382_v17 = vld [vmem:[#allocation11 + $0x74] ss:$8 sps:$4 sm:$0xff]   ;;  %s1642_s16 = scalar_lea.hbm %s3365_s13, %s3239_s21  ;;  %s2664_s19 = scalar_lea.vmem %s1645_s23, 128 }
  0xd9   : > { %p2665_p4 = scmp.ne.s32.totalorder %s1645_s23, %s2664_s19  ;;  %p3432_p10 = scmp.ne.s32.totalorder %s3416_s27, 0 }
  0xda   : > { %s2876_s5 = smov [#allocation18]  }
  0xdb   : > { %981 = vmatpush1.bf16.msra.mxu1 %v2328_v18  ;;  %v2385_v18 = vld [vmem:[#allocation11 + $0x64] ss:$8 sps:$4 sm:$0xff]   ;;  %p2666_p12 = pnand %p2665_p4, %p3432_p10  ;;  %s2668_s20 = sshll.u32 %s2876_s5, 4  ;;  %s2669_s20 = int_to_ptr.vmem [resolvable:$false] %s2668_s20 }
  0xdc   : > { %982 = vmatprep.subr.bf16.mxu1 %v2329_v19  ;;  %v2383_v19 = vld [vmem:[#allocation11 + $0x60] ss:$8 sps:$4 sm:$0xff]   ;;  %s2670_s3 = scalar_lea.vmem %s2669_s20, 256  ;;  %p2671_p0 = scmp.lt.s32.totalorder %s1645_s23, %s2669_s20 }
  0xdd   : > { %p2667_p2 = pneg %p2666_p12  ;;  %p2672_p9 = scmp.lt.s32.totalorder %s2670_s3, %s2664_s19 }
  0xdf   : > { %983 = vmatpush1.bf16.msra.mxu1 %v2331_v21  ;;  %v2386_v21 = vld [vmem:[#allocation11 + $0x50] ss:$8 sps:$4 sm:$0xff]   ;;  %p2673_p11 = por %p2672_p9, %p2671_p0 }
  0xe0   : > { %1373 = vmatprep.subr.bf16.mxu1 %v2382_v17 }
  0xe1   : > { %p2674_p1 = pnand %p2673_p11, %p2667_p2 }
  0xe2   : > { %1001 = vmatmul.mubr.bf16.vlgmr.msra.gmra.mxu1 %v859_v22  ;;  %v2391_v22 = vld [vmem:[#allocation11 + $0x44] ss:$8 sps:$4 sm:$0xff]  }
  0xe3   : > { %1405 = vmatprep.mubr.bf16.mxu1 %v2873_v0  ;;  %v2374_v0 = vld [vmem:[#allocation10 + $0x90] ss:$8 sps:$4 sm:$0xff]   ;;  %1374 = vmatpush1.bf16.msra.mxu1 %v2380_v16 }
  0xe4   : > { %1375 = vmatprep.subr.bf16.mxu1 %v2385_v18 }
  0xe7   : > { %1376 = vmatpush1.bf16.msra.mxu1 %v2383_v19 }
  0xe8   : > { %1377 = vmatprep.subr.bf16.mxu1 %v2388_v20 }
  0xeb   : > { %1378 = vmatpush1.bf16.msra.mxu1 %v2386_v21 }
  0xec   : > { %1379 = vmatprep.subr.bf16.mxu1 %v2391_v22 }
 0x14d   : > { %v763_v23 = vpop.xlane.xlu0 %762 }
 0x14e   : > { %v764_v24 = vmax.f32 %v763_v23, 1e-12  ;;  %v2389_v23 = vld [vmem:[#allocation11 + $0x40] ss:$8 sps:$4 sm:$0xff]  }
 0x14f   : > { %1380 = vmatpush1.bf16.msra.mxu1 %v2389_v23 }
 0x150   : > { %2420 = vrsqrt.f32 %v764_v24  ;;  %v2394_v24 = vld [vmem:[#allocation11 + $0x34] ss:$8 sps:$4 sm:$0xff]  }
 0x151   : > { %v770_v25 = vpop.xlane.xlu0 %769  ;;  %1381 = vmatprep.subr.bf16.mxu1 %v2394_v24 }
 0x152   : > { %v771_v26 = vmax.f32 %v770_v25, 1e-12  ;;  %v2392_v25 = vld [vmem:[#allocation11 + $0x30] ss:$8 sps:$4 sm:$0xff]  }
 0x153   : > { %1382 = vmatpush1.bf16.msra.mxu1 %v2392_v25 }
 0x154   : > { %2422 = vrsqrt.f32 %v771_v26  ;;  %v2397_v26 = vld [vmem:[#allocation11 + $0x24] ss:$8 sps:$4 sm:$0xff]  }
 0x155   : > { %1383 = vmatprep.subr.bf16.mxu1 %v2397_v26 }
 0x15d   : > { %v2421_v27 = vpop.eup %2420 }
 0x15e   : > { %v766_v29 = vmul.f32 %v2421_v27, %v760_v6  ;;  %v2395_v27 = vld [vmem:[#allocation11 + $0x20] ss:$8 sps:$4 sm:$0xff]  }
 0x15f   : > { %1384 = vmatpush1.bf16.msra.mxu1 %v2395_v27 }
 0x160   : > { %2148 = vmatpush3.xpose.msra.mxu0 %v766_v29  ;;  %844 = vst [vmem:[#allocation17] sm:$0xff] %v766_v29  ;;  %v2398_v29 = vld [vmem:[#allocation11 + $0x10] ss:$8 sps:$4 sm:$0xff]  }
 0x161   : > { %v2423_v30 = vpop.eup %2422  ;;  %1217 = vmatprep.subr.bf16.mxu0 %v2334_v28  ;;  %v2400_v28 = vld [vmem:[#allocation11 + $0x14] ss:$8 sps:$4 sm:$0xff]  }
 0x162   : > { %v773_v32 = vmul.f32 %v2423_v30, %v767_v8  ;;  %1385 = vmatprep.subr.bf16.mxu1 %v2400_v28  ;;  %v2403_v30 = vld [vmem:[#allocation11 + $0x4] ss:$8 sps:$4 sm:$0xff]  }
 0x163   : > { %1386 = vmatpush1.bf16.msra.mxu1 %v2398_v29 }
 0x164   : > { %2150 = vmatmul.mubr.f32.vlgmr.msra.gmra.mxu0 %v773_v32  ;;  %845 = vst [vmem:[%s713_s9] sm:$0xff] %v773_v32  ;;  %1387 = vmatprep.subr.bf16.mxu1 %v2403_v30  ;;  %v2404_v32 = vld [vmem:[#allocation14 + $0x78] sm:$0xff]  }
 0x165   : > { %1218 = vmatpush1.bf16.msra.mxu0 %v2332_v31  ;;  %v2401_v31 = vld [vmem:[#allocation11] ss:$8 sps:$4 sm:$0xff]  }
 0x166   : > { %1219 = vmatprep.subr.bf16.mxu0 %v2337_v33  ;;  %v848_v33 = vld [vmem:[#allocation7] sm:$0x1] }
 0x167   : > { %1388 = vmatpush1.bf16.msra.mxu1 %v2401_v31  ;;  %2424 = vrcp.f32 %v848_v33 }
 0x168   : > { %2125 = vmatprep.subr.bf16.mxu1 %v2404_v32 }
 0x169   : > { %1220 = vmatpush1.bf16.msra.mxu0 %v2335_v34 }
 0x16a   : > { %1221 = vmatprep.subr.bf16.mxu0 %v2340_v35 }
 0x16d   : > { %1222 = vmatpush1.bf16.msra.mxu0 %v2338_v36 }
 0x16e   : > { %1223 = vmatprep.subr.bf16.mxu0 %v2343_v37 }
 0x171   : > { %1224 = vmatpush1.bf16.msra.mxu0 %v2341_v38 }
 0x172   : > { %1225 = vmatprep.subr.bf16.mxu0 %v2346_v39  ;;  %v1045_v39 = vld [vmem:[%s3358_s6] sm:$0x3] }
 0x174   : > { %v2425_v34 = vpop.eup %2424 }
 0x175   : > { %1226 = vmatpush1.bf16.msra.mxu0 %v2344_v40  ;;  %v854_v35 = vrot.slane %v2425_v34, %v3204_v62  ;;  %v1050_v40 = vrot.slane %v1045_v39, %v3204_v62 }
 0x176   : > { %1227 = vmatprep.subr.bf16.mxu0 %v2349_v41  ;;  %v1054_v41 = vrot.slane %v1045_v39, %v3209_v1 }
 0x179   : > { %1228 = vmatpush1.bf16.msra.mxu0 %v2347_v42 }
 0x17a   : > { %1229 = vmatprep.subr.bf16.mxu0 %v2352_v43 }
 0x17d   : > { %1230 = vmatpush1.bf16.msra.mxu0 %v2350_v44 }
 0x17e   : > { %1231 = vmatprep.subr.bf16.mxu0 %v2355_v45 }
 0x181   : > { %1232 = vmatpush1.bf16.msra.mxu0 %v2353_v46 }
 0x182   : > { %1233 = vmatprep.subr.bf16.mxu0 %v2358_v47 }
 0x185   : > { %1234 = vmatpush2.bf16.msra.mxu0 %v2356_v48 }
 0x186   : > { %1235 = vmatprep.subr.bf16.mxu0 %v2361_v49 }
 0x189   : > { %1236 = vmatpush2.bf16.msra.mxu0 %v2359_v50  ;;  %v1261_v50 = vld [vmem:[%s750_s24] sm:$0xff] }
 0x18a   : > { %1237 = vmatprep.subr.bf16.mxu0 %v2364_v51 }
 0x18d   : > { %1238 = vmatpush2.bf16.msra.mxu0 %v2362_v52 }
 0x18e   : > { %1239 = vmatprep.subr.bf16.mxu0 %v2367_v53 }
 0x191   : > { %1240 = vmatpush2.bf16.msra.mxu0 %v2365_v54  ;;  %v2405_v54 = vld [vmem:[#allocation14 + $0x38] sm:$0xff]  }
 0x192   : > { %1241 = vmatprep.subr.bf16.mxu0 %v2370_v55 }
 0x195   : > { %1242 = vmatpush2.bf16.msra.mxu0 %v2368_v57  ;;  %v2407_v57 = vld [vmem:[#allocation14 + $0x30] sm:$0xff]  }
 0x196   : > { %1243 = vmatprep.subr.bf16.mxu0 %v2373_v58  ;;  %v2408_v58 = vld [vmem:[#allocation14 + $0x68] sm:$0xff]  }
 0x199   : > { %1244 = vmatpush2.bf16.msra.mxu0 %v2371_v60  ;;  %v2410_v60 = vld [vmem:[#allocation14 + $0x60] sm:$0xff]  }
 0x19a   : > { %1245 = vmatprep.subr.bf16.mxu0 %v2376_v61  ;;  %v2411_v61 = vld [vmem:[#allocation14 + $0x20] sm:$0xff]  }
 0x19d   : > { %1246 = vmatpush2.bf16.msra.mxu0 %v2374_v0  ;;  %v2413_v0 = vld [vmem:[#allocation14 + $0x18] sm:$0xff]  }
 0x19e   : > { %1247 = vmatprep.subr.bf16.mxu0 %v2379_v2  ;;  %v2414_v2 = vld [vmem:[#allocation14 + $0x50] sm:$0xff]  }
 0x1a1   : > { %1248 = vmatpush2.bf16.msra.mxu0 %v2377_v4  ;;  %v2416_v4 = vld [vmem:[#allocation14 + $0x48] sm:$0xff]  }
 0x1a2   : > { %v1002_v6 = vpop.f32.mrf.mxu1 }
 0x1a3   : > { %v1003_v7 = vadd.f32 %v1002_v6, %v881_v3  ;;  %v2415_v3 = vld [vmem:[#allocation14 + $0x10] sm:$0xff]   ;;  %v2418_v6 = vld [vmem:[#allocation14 + $0x40] sm:$0xff]  }
 0x1a4   : > { %v1004_v8 = vpop.f32.mrf.mxu1 }
 0x1a5   : > { %v1005_v9 = vadd.f32 %v1004_v8, %v885_v5  ;;  %v1009_v10 = vmax.f32 %v1003_v7, 0.0  ;;  %v2417_v5 = vld [vmem:[#allocation14 + $0x8] sm:$0xff]   ;;  %v2419_v7 = vld [vmem:[#allocation14] sm:$0xff]   ;;  %v1281_v8 = vld [vmem:[#allocation13] sm:$0x3] }
 0x1a6   : > { %v1006_v11 = vpop.f32.mrf.mxu1 }
 0x1a7   : > { %v1010_v12 = vmax.f32 %v1005_v9, 0.0  ;;  %v1011_v15 = vpack.c.bf16 %v1009_v10, %v1009_v10  ;;  %v1286_v9 = vrot.slane %v1281_v8, %v3204_v62  ;;  %v1290_v10 = vrot.slane %v1281_v8, %v3209_v1 }
 0x1a8   : > { %v1007_v13 = vpop.f32.mrf.mxu1 }
 0x1a9   : > { %v1012_v14 = vpack.c.bf16 %v1010_v12, %v1010_v12 }
 0x1ab   : > { %1249 = vmatprep.mubr.bf16.mxu0 %v1012_v14 }
 0x1ac   : > { %1250 = vmatmul.mubr.bf16.vlgmr.msra.gmra.mxu0 %v1011_v15 }
 0x224   : > { %v840_v36 = vpop.f32.mrf.mxu0 }
 0x225   : > { %847 = vst.msk [vmem:[%s758_s18] sm:$0xff] %vm846_vm1, %v840_v36  ;;  %v856_v37 = vmul.f32 %v854_v35, %v840_v36 }
 0x226   : > { %v2151_v38 = vpop.f32.mrf.mxu0 }
 0x227   : > { %857 = vst.msk [vmem:[%s754_s26] sm:$0xff] %vm846_vm1, %v856_v37  ;;  %s3385_s26 = scalar_lea.sflag [#allocation19], %s3174_s29 }
 0x26c   : > { %v1251_v42 = vpop.f32.mrf.mxu0 }
 0x26d   : > { %v1252_v43 = vadd.f32 %v1251_v42, %v1050_v40 }
 0x26e   : > { %v1253_v44 = vpop.f32.mrf.mxu0 }
 0x26f   : > { %1594 = vst [vmem:[%s3384_s8] sm:$0xff] %v1252_v43  ;;  %v1254_v45 = vadd.f32 %v1253_v44, %v1054_v41 }
 0x270   : > { %v1255_v46 = vpop.f32.mrf.mxu0 }
 0x271   : > { %v1258_v47 = vmul.f32 0.5, %v1254_v45  ;;  %1595 = vst [vmem:[%s3383_s10] sm:$0xff] %v1254_v45 }
 0x272   : > { %v1256_v48 = vpop.f32.mrf.mxu0 }
 0x273   : > { %v1259_v49 = vmul.f32 1.442695, %v1258_v47 }
 0x275   : > { %2426 = vpow2.f32 %v1259_v49 }
 0x282   : > { %v2427_v51 = vpop.eup %2426 }
 0x283   : > { %v1262_v52 = vmul.f32 %v2427_v51, %v1261_v50 }
 0x285   : > { %v1263_v53 = vadd.f32 %v1262_v52, %v1252_v43 }
 0x287   : > { %v1264_v55 = vpack.c.bf16 %v1263_v53, %v1263_v53 }
 0x289   : > { %1406 = vmatmul.mubr.bf16.vlgmr.msra.gmra.mxu1 %v1264_v55 }
 0x28a   : > { %2126 = vmatpush3.bf16.msra.mxu1 %v2405_v54 }
 0x28b   : > { %2127 = vmatprep.subr.bf16.mxu1 %v2406_v56 }
 0x28e   : > { %2128 = vmatpush3.bf16.msra.mxu1 %v2407_v57 }
 0x28f   : > { %2129 = vmatprep.subr.bf16.mxu1 %v2408_v58 }
 0x292   : > { %2130 = vmatpush3.bf16.msra.mxu1 %v2409_v59 }
 0x293   : > { %2131 = vmatprep.subr.bf16.mxu1 %v2410_v60 }
 0x296   : > { %2132 = vmatpush3.bf16.msra.mxu1 %v2411_v61 }
 0x297   : > { %2133 = vmatprep.subr.bf16.mxu1 %v2412_v63 }
 0x29a   : > { %2134 = vmatpush3.bf16.msra.mxu1 %v2413_v0 }
 0x29b   : > { %2135 = vmatprep.subr.bf16.mxu1 %v2414_v2 }
 0x29e   : > { %2136 = vmatpush3.bf16.msra.mxu1 %v2415_v3 }
 0x29f   : > { %2137 = vmatprep.subr.bf16.mxu1 %v2416_v4 }
 0x2a2   : > { %2138 = vmatpush3.bf16.msra.mxu1 %v2417_v5 }
 0x2a3   : > { %2139 = vmatprep.subr.bf16.mxu1 %v2418_v6 }
 0x2a6   : > { %2140 = vmatpush3.bf16.msra.mxu1 %v2419_v7 }
 0x349   : > { %v1407_v11 = vpop.f32.mrf.mxu1 }
 0x34a   : > { %v1408_v12 = vadd.f32 %v1407_v11, %v1286_v9 }
 0x34b   : > { %v1409_v13 = vpop.f32.mrf.mxu1 }
 0x34c   : > { %v1410_v14 = vadd.f32 %v1409_v13, %v1290_v10  ;;  %v1414_v15 = vmax.f32 %v1408_v12, 0.0 }
 0x34d   : > { %v1411_v16 = vpop.f32.mrf.mxu1 }
 0x34e   : > { %v1415_v17 = vmax.f32 %v1410_v14, 0.0  ;;  %v1416_v20 = vpack.c.bf16 %v1414_v15, %v1414_v15 }
 0x34f   : > { %v1412_v18 = vpop.f32.mrf.mxu1 }
 0x350   : > { %v1417_v19 = vpack.c.bf16 %v1415_v17, %v1415_v17 }
 0x352   : > { %1585 = vmatprep.mubr.bf16.mxu1 %v1417_v19 }
 0x353   : > { %1586 = vmatmul.mubr.bf16.vlgmr.msra.gmra.mxu1 %v1416_v20 }
 0x354   : > { %2677 = shalt.err (!%p2674_p1)
}
 0x355   : > { %s2678_s9 = scalar_lea.hbm %s1642_s16, 128  ;;  %s2682_s2 = scalar_lea.hbm %s3365_s13, 256 }
 0x356   : > { %p2679_p7 = scmp.ne.s32.totalorder %s1642_s16, %s2678_s9  ;;  %p2683_p5 = scmp.lt.s32.totalorder %s1642_s16, %s3365_s13 }
 0x357   : > { %p2684_p8 = scmp.lt.s32.totalorder %s2682_s2, %s2678_s9 }
 0x358   : > { %p2680_p13 = pnand %p2679_p7, %p3432_p10 }
 0x359   : > { %p2685_p3 = por %p2684_p8, %p2683_p5 }
 0x35a   : > { %p2681_p6 = pneg %p2680_p13 }
 0x35c   : > { %p2686_p4 = pnand %p2685_p3, %p2681_p6 }
 0x35e   : > { %2689 = shalt.err (!%p2686_p4)
}
 0x35f   : > { %2188 = dma.vmem_to_hbm [thread:$0]  (%p3432_p10), %s1645_s23, 128, %s1642_s16, %s3385_s26  }
 0x360   : > { %s1674_s20 = scalar_lea.hbm %s3369_s17, %s3239_s21  ;;  %s3433_s3 = scalar_lea.vmem [#allocation21], %s3177_s7 }
 0x361   : > { %s1676_s8 = sshll.u32 %s3433_s3, 4  ;;  %s3386_s10 = scalar_lea.sflag [#allocation22], %s3174_s29  ;;  %s1677_s8 = int_to_ptr.vmem [resolvable:$true] %s1676_s8 }
 0x362   : > { %s2690_s9 = scalar_lea.vmem %s1677_s8, 128  ;;  %s2877_s24 = smov [#allocation21]  }
 0x363   : > { %p2691_p12 = scmp.ne.s32.totalorder %s1677_s8, %s2690_s9  ;;  %s2694_s18 = sshll.u32 %s2877_s24, 4  ;;  %s2695_s18 = int_to_ptr.vmem [resolvable:$false] %s2694_s18 }
 0x364   : > { %s2696_s2 = scalar_lea.vmem %s2695_s18, 256  ;;  %p2697_p9 = scmp.lt.s32.totalorder %s1677_s8, %s2695_s18 }
 0x365   : > { %p2692_p2 = pnand %p2691_p12, %p3432_p10  ;;  %p2698_p11 = scmp.lt.s32.totalorder %s2696_s2, %s2690_s9 }
 0x367   : > { %p2693_p0 = pneg %p2692_p2  ;;  %p2699_p1 = por %p2698_p11, %p2697_p9 }
 0x369   : > { %p2700_p7 = pnand %p2699_p1, %p2693_p0 }
 0x36b   : > { %2703 = shalt.err (!%p2700_p7)
}
 0x36c   : > { %s2704_s23 = scalar_lea.hbm %s1674_s20, 128  ;;  %s2708_s5 = scalar_lea.hbm %s3369_s17, 256 }
 0x36d   : > { %p2705_p13 = scmp.ne.s32.totalorder %s1674_s20, %s2704_s23  ;;  %p2709_p8 = scmp.lt.s32.totalorder %s1674_s20, %s3369_s17 }
 0x36e   : > { %p2710_p3 = scmp.lt.s32.totalorder %s2708_s5, %s2704_s23 }
 0x36f   : > { %p2706_p6 = pnand %p2705_p13, %p3432_p10 }
 0x370   : > { %p2711_p4 = por %p2710_p3, %p2709_p8 }
 0x371   : > { %p2707_p5 = pneg %p2706_p6 }
 0x373   : > { %p2712_p12 = pnand %p2711_p4, %p2707_p5 }
 0x375   : > { %2715 = shalt.err (!%p2712_p12)
}
 0x376   : > { %2190 = dma.vmem_to_hbm [thread:$0]  (%p3432_p10), %s1677_s8, 128, %s1674_s20, %s3386_s10  }
 0x377   : > { %s2878_s9 = smov [#allocation17]   ;;  %s3434_s18 = scalar_lea.vmem [#allocation23], %s3177_s7 }
 0x378   : > { %s1631_s24 = sshll.u32 %s2878_s9, 4  ;;  %s1689_s2 = sshll.u32 %s3434_s18, 4  ;;  %s1632_s24 = int_to_ptr.vmem [resolvable:$true] %s1631_s24  ;;  %s1690_s2 = int_to_ptr.vmem [resolvable:$true] %s1689_s2 }
 0x379   : > { %s2716_s16 = scalar_lea.vmem %s1632_s24, 128  ;;  %p3435_p0 = scmp.eq.s32.totalorder %s2997_s1, 1 }
 0x37a   : > { %p2717_p2 = scmp.ne.s32.totalorder %s1632_s24, %s2716_s16  ;;  %p2723_p1 = scmp.lt.s32.totalorder %s1632_s24, %s1632_s24 }
 0x37b   : > { %p2724_p7 = scmp.lt.s32.totalorder %s2716_s16, %s2716_s16 }
 0x37c   : > { %p2718_p9 = pnand %p2717_p2, %p3435_p0 }
 0x37d   : > { %p2725_p13 = por %p2724_p7, %p2723_p1 }
 0x37e   : > { %p2719_p11 = pneg %p2718_p9 }
 0x380   : > { %p2726_p6 = pnand %p2725_p13, %p2719_p11 }
 0x382   : > { %2729 = shalt.err (!%p2726_p6)
}
 0x383   : > { %p3436_p5 = pmov %p3435_p0  ;;  %s3437_s19 = sld [smem:[#allocation45_spill]] }
 0x384   : > { %s2740_s3 = scalar_lea.vmem %s1690_s2, 128  ;;  %s2879_s9 = smov [#allocation23]  }
 0x385   : > { %2187 = dma.vmem_to_hbm [thread:$0]  (%p3436_p5), %s1632_s24, 128, %s3364_s12, [#allocation4]  }
 0x386   : > { %p2741_p8 = scmp.ne.s32.totalorder %s1690_s2, %s2740_s3  ;;  %s2744_s18 = sshll.u32 %s2879_s9, 4  ;;  %s2745_s18 = int_to_ptr.vmem [resolvable:$false] %s2744_s18 }
 0x387   : > { %s2746_s16 = scalar_lea.vmem %s2745_s18, 256  ;;  %p2747_p12 = scmp.lt.s32.totalorder %s1690_s2, %s2745_s18 }
 0x388   : > { %p2742_p3 = pnand %p2741_p8, %p3432_p10  ;;  %p2748_p2 = scmp.lt.s32.totalorder %s2746_s16, %s2740_s3 }
 0x389   : > { %s1687_s5 = scalar_lea.hbm %s3437_s19, %s3239_s21 }
 0x38a   : > { %p2743_p4 = pneg %p2742_p3  ;;  %p2749_p0 = por %p2748_p2, %p2747_p12 }
 0x38c   : > { %p2750_p9 = pnand %p2749_p0, %p2743_p4 }
 0x38e   : > { %2753 = shalt.err (!%p2750_p9)
}
 0x38f   : > { %s2754_s24 = scalar_lea.hbm %s1687_s5, 128  ;;  %s2758_s20 = scalar_lea.hbm %s3437_s19, 256 }
 0x390   : > { %p2755_p11 = scmp.ne.s32.totalorder %s1687_s5, %s2754_s24  ;;  %p2759_p13 = scmp.lt.s32.totalorder %s1687_s5, %s3437_s19 }
 0x391   : > { %p2760_p6 = scmp.lt.s32.totalorder %s2758_s20, %s2754_s24 }
 0x392   : > { %p2756_p1 = pnand %p2755_p11, %p3432_p10 }
 0x393   : > { %p2761_p5 = por %p2760_p6, %p2759_p13 }
 0x394   : > { %p2757_p7 = pneg %p2756_p1 }
 0x396   : > { %p2762_p8 = pnand %p2761_p5, %p2757_p7 }
 0x398   : > { %2765 = shalt.err (!%p2762_p8)
}
 0x399   : > { %s3438_s3 = scalar_lea.sflag [#allocation22], %s3174_s29  ;;  %v2094_v1 = vld [vmem:[#allocation16] ss:$0 sm:$0xff]  ;;  %s732_s9 = scalar_lea.vmem [#allocation20], %s3177_s7 }
 0x39a   : > { %2191 = dma.vmem_to_hbm [thread:$0]  (%p3432_p10), %s1690_s2, 128, %s1687_s5, %s3438_s3  }
 0x39b   : > { %s1663_s18 = sshll.u32 %s732_s9, 4  ;;  %s3439_s24 = sld [smem:[#allocation44_spill]]  ;;  %s1664_s18 = int_to_ptr.vmem [resolvable:$true] %s1663_s18 }
 0x39c   : > { %s2766_s23 = scalar_lea.vmem %s1664_s18, 128  ;;  %s2880_s2 = smov [#allocation20]  }
 0x39d   : > { %p2767_p3 = scmp.ne.s32.totalorder %s1664_s18, %s2766_s23  ;;  %s2770_s5 = sshll.u32 %s2880_s2, 4  ;;  %s2771_s5 = int_to_ptr.vmem [resolvable:$false] %s2770_s5 }
 0x39e   : > { %s2772_s7 = scalar_lea.vmem %s2771_s5, 256  ;;  %p2773_p2 = scmp.lt.s32.totalorder %s1664_s18, %s2771_s5 }
 0x39f   : > { %p2768_p4 = pnand %p2767_p3, %p3432_p10  ;;  %p2774_p0 = scmp.lt.s32.totalorder %s2772_s7, %s2766_s23 }
 0x3a1   : > { %s1661_s26 = scalar_lea.hbm %s3439_s24, %s3239_s21  ;;  %p2769_p12 = pneg %p2768_p4 }
 0x3a2   : > { %p2775_p9 = por %p2774_p0, %p2773_p2 }
 0x3a4   : > { %p2776_p11 = pnand %p2775_p9, %p2769_p12 }
 0x413   : > { %v2141_v62 = vpop.f32.mrf.mxu1 }
 0x415   : > { %v2142_v21 = vpop.f32.mrf.mxu1 }
 0x416   : > { %v2143_v22 = vadd.f32 %v2142_v21, %v2141_v62 }
 0x417   : > { %v2144_v23 = vpop.f32.mrf.mxu1 }
 0x418   : > { %v1588_v24 = vadd.f32 %v2143_v22, %v2094_v1 }
 0x419   : > { %v2145_v25 = vpop.f32.mrf.mxu1 }
 0x41a   : > { %1593 = vst [vmem:[%s732_s9] sm:$0xff] %v1588_v24 }
 0x41b   : > { %2779 = shalt.err (!%p2776_p11)
}
 0x41c   : > { %s2780_s20 = scalar_lea.hbm %s1661_s26, 128  ;;  %s2784_s3 = scalar_lea.hbm %s3439_s24, 256 }
 0x41d   : > { %p2781_p1 = scmp.ne.s32.totalorder %s1661_s26, %s2780_s20  ;;  %p2785_p6 = scmp.lt.s32.totalorder %s1661_s26, %s3439_s24 }
 0x41e   : > { %p2786_p5 = scmp.lt.s32.totalorder %s2784_s3, %s2780_s20 }
 0x41f   : > { %p2782_p7 = pnand %p2781_p1, %p3432_p10 }
 0x420   : > { %p2787_p8 = por %p2786_p5, %p2785_p6 }
 0x421   : > { %p2783_p13 = pneg %p2782_p7 }
 0x423   : > { %p2788_p3 = pnand %p2787_p8, %p2783_p13 }
 0x425   : > { %2791 = shalt.err (!%p2788_p3)
}
 0x426   : > { %s3440_s16 = scalar_lea.sflag [#allocation19], %s3174_s29  ;;  %p3441_p4 = scmp.eq.s32.totalorder %s2997_s1, 1 }
 0x427   : > { %2189 = dma.vmem_to_hbm [thread:$0]  (%p3432_p10), %s1664_s18, 128, %s1661_s26, %s3440_s16  }
 0x428   : > { %2833 = dma.done.wait (%p3441_p4), [#allocation4], 128   ;;  %p3442_p12 = pmov %p3441_p4 }
 0x42a   : > { %2835 = vsyncadd (%p3442_p12), [#allocation4], 4294967168 }
 0x42b PF: > { %s3443_s23 = sadd.s32 4294967294, %s2858_s30   ;;  %p3444_p2 = scmp.ne.s32.totalorder %s3417_s0, 0 }
 0x42c   : > { %s1705_s2 = sand.u32 1, %s3443_s23   ;;  %p3445_p0 = scmp.ge.s32.totalorder %s2858_s30, 2 }
 0x42d   : > { %s1706_s27 = scalar_lea.sflag [#allocation19], %s1705_s2 }
 0x42e   : > { %p2228_p9 = pnand %p3445_p0, %p3444_p2 }
 0x430   : > { %p2229_p11 = pneg %p2228_p9 }
 0x432   : > { %2837 = dma.done.wait (%p2229_p11), %s1706_s27, 256  }
 0x433   : > { %2839 = vsyncadd (%p2229_p11), %s1706_s27, 4294967040  ;;  %s1738_s29 = scalar_lea.sflag [#allocation22], %s1705_s2 }
 0x434   : > { %2841 = dma.done.wait (%p2229_p11), %s1738_s29, 256  }
 0x435   : > { %2843 = vsyncadd (%p2229_p11), %s1738_s29, 4294967040  ;;  %s3446_s1 = sld [smem:[#allocation33_spill]]  ;;  %p40_p10 = scmp.ge.s32.totalorder %s3102_s25, 4  }
 0x436   : > { %s3447_s29 = sld [smem:[#allocation34_spill]]  ;;  %s3448_s27 = smov %s2850_s28 }
 0x437   : > { %s3450_s30 = smov %s3102_s25  ;;  %42 = sbr.rel (!%p40_p10) target bundleno = 24 (0x18), region = 229 }
 0x43b   : > { %s3449_s28 = smov %s3446_s1 }
 0x43c   :  { %1752 = vsyncpa [#allocation3], 1 }
 0x43d   :  { %1754 = vsyncpa [#allocation3 + $0x1], 1 }
 0x43e   :  { %1755 = vsyncpa [#allocation6], 1 }
 0x43f   :  { %1757 = vsyncpa [#allocation6 + $0x1], 1 }
 0x440   :  { %1758 = vsyncpa [#allocation9], 1 }
 0x441   :  { %1759 = vsyncpa [#allocation12], 1 }
 0x442   :  { %1760 = vsyncpa [#allocation15], 1 }
 0x443   :  { %1761 = vsyncpa [#allocation4], 1 }
 0x444   :  { %1763 = vsyncpa [#allocation4 + $0x1], 1 }
 0x445   :  { %1764 = vsyncpa [#allocation19], 1 }
 0x446   :  { %1766 = vsyncpa [#allocation19 + $0x1], 1 }
 0x447   :  { %1767 = vsyncpa [#allocation22], 1 }
 0x448   :  { %1769 = vsyncpa [#allocation22 + $0x1], 1 }

</bundles_post_ra>
